<compile_context>
chip_gen: v7x
topology: tpu7x:2x2x1
jax: 0.10.0
libtpu: 0.0.40
codegen_flags: <defaults>
</compile_context>

<pallas_src>
import functools
import math

import jax
import jax.numpy as jnp
from jax import lax
from jax.experimental import pallas as pl
from jax.experimental.pallas import tpu as pltpu


# ----------------------------------------------------------------------------
# helpers
# ----------------------------------------------------------------------------

def _pick_tile(n, target, align):
    """Largest divisor of n that is a multiple of `align` and <= target.

    Returns n itself when n <= target (block == full dim, always legal)."""
    if n <= target:
        return n
    t = (target // align) * align
    while t >= align:
        if n % t == 0:
            return t
        t -= align
    return n  # fallback: single full block


def _residual_layernorm(x, y, gamma, beta, eps=1e-5):
    """LayerNorm(x + y) over the last axis, f32 math (eps matches nn.LayerNorm)."""
    z = x + y
    mean = jnp.mean(z, axis=-1, keepdims=True)
    c = z - mean
    var = jnp.mean(c * c, axis=-1, keepdims=True)
    return c * lax.rsqrt(var + eps) * gamma + beta


# ----------------------------------------------------------------------------
# QKV projection kernel (wide matmuls, head-major bf16 outputs)
# ----------------------------------------------------------------------------

def _qkv_proj_kernel(x_ref, wq_ref, wk_ref, wv_ref, q_ref, k_ref, v_ref, *,
                     n_heads, d_k, d_v):
    xb = x_ref[0].astype(jnp.bfloat16)                       # (tl, D)
    qw = jnp.dot(xb, wq_ref[...], preferred_element_type=jnp.float32)  # (tl, h*dk)
    kw = jnp.dot(xb, wk_ref[...], preferred_element_type=jnp.float32)
    vw = jnp.dot(xb, wv_ref[...], preferred_element_type=jnp.float32)
    # Scatter the wide results into head-major layout with static slice stores
    # (cheap; keeps the attention kernel free of in-kernel reshapes/transposes).
    for hh in range(n_heads):
        q_ref[0, hh] = qw[:, hh * d_k:(hh + 1) * d_k].astype(jnp.bfloat16)
        k_ref[0, hh] = kw[:, hh * d_k:(hh + 1) * d_k].astype(jnp.bfloat16)
        v_ref[0, hh] = vw[:, hh * d_v:(hh + 1) * d_v].astype(jnp.bfloat16)


def qkv_projection(x, wq, wk, wv, *, n_heads, d_k, d_v):
    """x: (B,L,D) f32; wq/wk: (D,h*dk) bf16; wv: (D,h*dv) bf16 ->
       Q,K: (B,h,L,dk) bf16; V: (B,h,L,dv) bf16."""
    B, L, D = x.shape
    hk, hv = n_heads * d_k, n_heads * d_v
    tl = _pick_tile(L, 256, 8)

    def const(shape):  # grid-invariant operand: single-buffered
        return pl.BlockSpec(shape, lambda b, i: tuple(0 for _ in shape),
                            pipeline_mode=pl.Buffered(1))

    return pl.pallas_call(
        functools.partial(_qkv_proj_kernel, n_heads=n_heads, d_k=d_k, d_v=d_v),
        out_shape=(
            jax.ShapeDtypeStruct((B, n_heads, L, d_k), jnp.bfloat16),
            jax.ShapeDtypeStruct((B, n_heads, L, d_k), jnp.bfloat16),
            jax.ShapeDtypeStruct((B, n_heads, L, d_v), jnp.bfloat16),
        ),
        grid=(B, L // tl),
        in_specs=[
            pl.BlockSpec((1, tl, D), lambda b, i: (b, i, 0)),
            const((D, hk)), const((D, hk)), const((D, hv)),
        ],
        out_specs=(
            pl.BlockSpec((1, n_heads, tl, d_k), lambda b, i: (b, 0, i, 0)),
            pl.BlockSpec((1, n_heads, tl, d_k), lambda b, i: (b, 0, i, 0)),
            pl.BlockSpec((1, n_heads, tl, d_v), lambda b, i: (b, 0, i, 0)),
        ),
        compiler_params=pltpu.CompilerParams(
            dimension_semantics=("parallel", "parallel")),
    )(x, wq, wk, wv)


# ----------------------------------------------------------------------------
# Flash-style causal MHA + W_O + residual + LayerNorm kernel
# ----------------------------------------------------------------------------

def _flash_mha_kernel(xq_ref, q_ref, k_ref, v_ref, wo_ref, g_ref, beta_ref,
                      o_ref, m_scr, l_scr, acc_scr, cat_scr, *,
                      n_heads, d_v, tq, tkv, sm_scale):
    kv_idx = pl.program_id(2)
    q_start = pl.program_id(1) * tq
    kv_start = kv_idx * tkv

    @pl.when(kv_idx == 0)
    def _():
        m_scr[...] = jnp.full_like(m_scr, -1e30)
        l_scr[...] = jnp.zeros_like(l_scr)
        acc_scr[...] = jnp.zeros_like(acc_scr)

    # Causal block-skip: fully-future kv tiles contribute nothing.
    @pl.when(kv_start <= q_start + (tq - 1))
    def _():
        q = q_ref[0]                                    # (h, tq,  dk) bf16
        k = k_ref[0]                                    # (h, tkv, dk) bf16
        v = v_ref[0]                                    # (h, tkv, dv) bf16
        # Heads ride the dot_general batch dim (no per-head unrolled matmuls).
        s = lax.dot_general(q, k, (((2,), (2,)), ((0,), (0,))),
                            preferred_element_type=jnp.float32) * sm_scale
        row = q_start + lax.broadcasted_iota(jnp.int32, (n_heads, tq, tkv), 1)
        col = kv_start + lax.broadcasted_iota(jnp.int32, (n_heads, tq, tkv), 2)
        s = jnp.where(col > row, jnp.float32(-1e30), s)

        m_prev = m_scr[...]
        m_new = jnp.maximum(m_prev, jnp.max(s, axis=-1, keepdims=True))
        alpha = jnp.exp(m_prev - m_new)
        p = jnp.exp(s - m_new)
        l_scr[...] = alpha * l_scr[...] + jnp.sum(p, axis=-1, keepdims=True)
        pv = lax.dot_general(p.astype(jnp.bfloat16), v,
                             (((2,), (1,)), ((0,), (0,))),
                             preferred_element_type=jnp.float32)   # (h, tq, dv)
        acc_scr[...] = alpha * acc_scr[...] + pv
        m_scr[...] = m_new

    @pl.when(kv_idx == pl.num_programs(2) - 1)
    def _():
        ctx = acc_scr[...] * pl.reciprocal(l_scr[...], approx=True)  # (h, tq, dv)
        # Concatenate heads into a lane-dense (tq, h*dv) slab so W_O runs as a
        # single wide-K matmul (finalize-only: h small static-slice stores).
        for hh in range(n_heads):
            cat_scr[:, hh * d_v:(hh + 1) * d_v] = ctx[hh]
        attn = jnp.dot(cat_scr[...].astype(jnp.bfloat16), wo_ref[...],
                       preferred_element_type=jnp.float32)           # (tq, D)
        o_ref[0] = _residual_layernorm(xq_ref[0], attn, g_ref[...], beta_ref[...])


def mha_sublayer(x, wq, wk, wv, wo, ln_g, ln_b, *, n_heads, d_k, d_v):
    """Full self-attention sublayer: LN(x + W_O(causal-MHA(x)))."""
    B, L, D = x.shape
    q, k, v = qkv_projection(x, wq, wk, wv, n_heads=n_heads, d_k=d_k, d_v=d_v)

    tq = _pick_tile(L, 256, 8)
    tkv = _pick_tile(L, 256, 8)
    hv = n_heads * d_v
    sm_scale = 1.0 / math.sqrt(D)   # reference scales by sqrt(x.shape[-1]) = d_model

    def const(shape):  # grid-invariant operand: single-buffered
        return pl.BlockSpec(shape, lambda b, i, kk: tuple(0 for _ in shape),
                            pipeline_mode=pl.Buffered(1))

    return pl.pallas_call(
        functools.partial(_flash_mha_kernel, n_heads=n_heads, d_v=d_v,
                          tq=tq, tkv=tkv, sm_scale=sm_scale),
        out_shape=jax.ShapeDtypeStruct((B, L, D), jnp.float32),
        grid=(B, L // tq, L // tkv),
        in_specs=[
            pl.BlockSpec((1, tq, D), lambda b, i, kk: (b, i, 0)),
            pl.BlockSpec((1, n_heads, tq, d_k), lambda b, i, kk: (b, 0, i, 0)),
            pl.BlockSpec((1, n_heads, tkv, d_k), lambda b, i, kk: (b, 0, kk, 0)),
            pl.BlockSpec((1, n_heads, tkv, d_v), lambda b, i, kk: (b, 0, kk, 0)),
            const((hv, D)),
            const((1, D)),
            const((1, D)),
        ],
        out_specs=pl.BlockSpec((1, tq, D), lambda b, i, kk: (b, i, 0)),
        scratch_shapes=[
            pltpu.VMEM((n_heads, tq, 1), jnp.float32),   # m (running max)
            pltpu.VMEM((n_heads, tq, 1), jnp.float32),   # l (running denom)
            pltpu.VMEM((n_heads, tq, d_v), jnp.float32),  # acc
            pltpu.VMEM((tq, hv), jnp.float32),            # head-concat slab
        ],
        compiler_params=pltpu.CompilerParams(
            dimension_semantics=("parallel", "parallel", "arbitrary")),
    )(x, q, k, v, wo, ln_g, ln_b)


# ----------------------------------------------------------------------------
# FFN sublayer kernel (d_ff-tiled reduction + fused residual/LayerNorm)
# ----------------------------------------------------------------------------

def _ffn_kernel(x_ref, w1_ref, b1_ref, w2_ref, b2_ref, g_ref, beta_ref,
                o_ref, acc_ref):
    f = pl.program_id(1)

    @pl.when(f == 0)
    def _():
        acc_ref[...] = jnp.zeros_like(acc_ref)

    xb = x_ref[...].astype(jnp.bfloat16)                              # (tm, D)
    h1 = jnp.dot(xb, w1_ref[...], preferred_element_type=jnp.float32) + b1_ref[...]
    h1 = jnp.maximum(h1, 0.0)                                         # ReLU (per d_ff slice)
    acc_ref[...] += jnp.dot(h1.astype(jnp.bfloat16), w2_ref[...],
                            preferred_element_type=jnp.float32)

    @pl.when(f == pl.num_programs(1) - 1)
    def _():
        y = acc_ref[...] + b2_ref[...]
        o_ref[...] = _residual_layernorm(x_ref[...], y, g_ref[...], beta_ref[...])


def ffn_sublayer(x2d, w1, b1, w2, b2, ln_g, ln_b):
    M, D = x2d.shape
    d_ff = w1.shape[1]
    tm = _pick_tile(M, 256, 8)
    tf = _pick_tile(d_ff, 512, 128)   # bounds W1/W2 tiles + (tm, tf) intermediate

    def const(shape):
        return pl.BlockSpec(shape, lambda i, f: tuple(0 for _ in shape),
                            pipeline_mode=pl.Buffered(1))

    return pl.pallas_call(
        _ffn_kernel,
        out_shape=jax.ShapeDtypeStruct((M, D), jnp.float32),
        grid=(M // tm, d_ff // tf),
        in_specs=[
            pl.BlockSpec((tm, D), lambda i, f: (i, 0)),
            pl.BlockSpec((D, tf), lambda i, f: (0, f)),
            pl.BlockSpec((1, tf), lambda i, f: (0, f)),
            pl.BlockSpec((tf, D), lambda i, f: (f, 0)),
            const((1, D)), const((1, D)), const((1, D)),
        ],
        out_specs=pl.BlockSpec((tm, D), lambda i, f: (i, 0)),
        scratch_shapes=[pltpu.VMEM((tm, D), jnp.float32)],
        compiler_params=pltpu.CompilerParams(
            dimension_semantics=("parallel", "arbitrary")),
    )(x2d, w1, b1, w2, b2, ln_g, ln_b)


# ----------------------------------------------------------------------------
# Tied-weight logits kernel (bf16 vocab table streamed, lane-dense tiles)
# ----------------------------------------------------------------------------

def _logits_kernel(x_ref, e_ref, bias_ref, o_ref):
    o_ref[...] = lax.dot_general(
        x_ref[...].astype(jnp.bfloat16), e_ref[...],
        (((1,), (1,)), ((), ())), preferred_element_type=jnp.float32,
    ) + bias_ref[...]


def tied_logits(x2d, emb_bf16, bias):
    """x2d: (M,D) f32; emb_bf16: (V,D) bf16 (tied table); bias: (1,V) f32 -> (M,V)."""
    M, D = x2d.shape
    V = emb_bf16.shape[0]
    tm = _pick_tile(M, 256, 8)
    tv = _pick_tile(V, 1024, 128)   # large lane-dense vocab tile (fits default scoped VMEM)
    return pl.pallas_call(
        _logits_kernel,
        out_shape=jax.ShapeDtypeStruct((M, V), jnp.float32),
        grid=(M // tm, V // tv),   # vocab innermost: x tile stays resident, emb streams
        in_specs=[
            pl.BlockSpec((tm, D), lambda i, j: (i, 0)),
            pl.BlockSpec((tv, D), lambda i, j: (j, 0)),
            pl.BlockSpec((1, tv), lambda i, j: (0, j)),
        ],
        out_specs=pl.BlockSpec((tm, tv), lambda i, j: (i, j)),
        compiler_params=pltpu.CompilerParams(
            dimension_semantics=("parallel", "parallel")),
    )(x2d, emb_bf16, bias)


# ----------------------------------------------------------------------------
# Model wrapper (glue in plain JAX)
# ----------------------------------------------------------------------------

def make_params(key, *, d_vocab, d_model, d_k, d_v, h, d_ff, n):
    bf16 = jnp.bfloat16

    def nrm(k, shape, s=0.02, dtype=jnp.float32):
        return (s * jax.random.normal(k, shape, dtype=jnp.float32)).astype(dtype)

    keys = jax.random.split(key, 3 + 12 * n)
    params = {
        "embedding": jax.random.normal(keys[0], (d_vocab, d_model), jnp.float32),
        "final_w": nrm(keys[1], (d_vocab, d_model), s=0.02),   # used only if untied
        "final_bias": nrm(keys[2], (1, d_vocab)),
        "layers": [],
    }
    ki = 3
    for _ in range(n):
        k = keys[ki:ki + 12]
        ki += 12
        params["layers"].append({
            # concatenated per-head projections: x @ W -> (L, h*d)
            "wq": nrm(k[0], (d_model, h * d_k), dtype=bf16),
            "wk": nrm(k[1], (d_model, h * d_k), dtype=bf16),
            "wv": nrm(k[2], (d_model, h * d_v), dtype=bf16),
            "wo": nrm(k[3], (h * d_v, d_model), dtype=bf16),   # W_O^T
            "ln1_g": 1.0 + nrm(k[4], (1, d_model)),
            "ln1_b": nrm(k[5], (1, d_model)),
            "w1": nrm(k[6], (d_model, d_ff), dtype=bf16),
            "b1": nrm(k[7], (1, d_ff)),
            "w2": nrm(k[8], (d_ff, d_model), dtype=bf16),
            "b2": nrm(k[9], (1, d_model)),
            "ln2_g": 1.0 + nrm(k[10], (1, d_model)),
            "ln2_b": nrm(k[11], (1, d_model)),
        })
    return params


def positional_encoding(L, d_model):
    i = 2.0 * jnp.arange(d_model // 2, dtype=jnp.float32)
    base_row = 10000.0 ** (-i[None, :] / d_model)                  # (1, d/2)
    cols = jnp.arange(L, dtype=jnp.float32)[:, None]               # (L, 1)
    half = cols * base_row                                         # (L, d/2)
    pe = jnp.stack([jnp.sin(half), jnp.cos(half)], axis=-1)        # interleave sin/cos
    return pe.reshape(L, d_model)


def decoder_only_transformer(tokens, params, *, d_model, n_heads, d_k, d_v,
                             tie_weights=True):
    B, L = tokens.shape
    emb_table = params["embedding"]                                # (V, D) f32

    # Embedding gather + tie-weight scale + positional encoding in plain JAX
    # (XLA fuses gather/scale/add).  Reference semantics:
    #   a = emb(tokens); a *= sqrt(3*d_model) [if tied]; a += (a + PE)
    #   => a = 2*scale*emb[tokens] + PE      (dropout is identity in eval)
    scale = math.sqrt(3 * d_model) if tie_weights else 1.0
    pe = positional_encoding(L, d_model)
    a = (2.0 * scale) * emb_table[tokens] + pe

    for p in params["layers"]:
        a = mha_sublayer(a, p["wq"], p["wk"], p["wv"], p["wo"],
                         p["ln1_g"], p["ln1_b"],
                         n_heads=n_heads, d_k=d_k, d_v=d_v)
        a2 = ffn_sublayer(a.reshape(B * L, d_model), p["w1"], p["b1"],
                          p["w2"], p["b2"], p["ln2_g"], p["ln2_b"])
        a = a2.reshape(B, L, d_model)

    # Final linear: logits = x @ W_final.T + bias (tied -> embedding table).
    # Stream the vocab table as bf16 (cast once here; f32 copy kept for gather).
    w_final = emb_table if tie_weights else params["final_w"]
    logits = tied_logits(a.reshape(B * L, d_model),
                         w_final.astype(jnp.bfloat16), params["final_bias"])
    return logits.reshape(B, L, w_final.shape[0])


# ----------------------------------------------------------------------------
# Main
# ----------------------------------------------------------------------------

if __name__ == "__main__":
    # Small, module-consistent shapes.
    B, L = 2, 8
    d_vocab, d_model = 64, 32
    d_k, d_v, h = 16, 16, 4
    d_ff = 4 * d_model
    n_layers = 2

    key = jax.random.PRNGKey(0)
    k_params, k_tokens = jax.random.split(key)

    params = make_params(
        k_params, d_vocab=d_vocab, d_model=d_model, d_k=d_k, d_v=d_v,
        h=h, d_ff=d_ff, n=n_layers,
    )
    tokens = jax.random.randint(k_tokens, (B, L), 0, d_vocab, dtype=jnp.int32)

    fwd = jax.jit(
        functools.partial(decoder_only_transformer, d_model=d_model,
                          n_heads=h, d_k=d_k, d_v=d_v, tie_weights=True)
    )
    logits = fwd(tokens, params)
    jax.block_until_ready(logits)

    assert logits.shape == (B, L, d_vocab)
    assert bool(jnp.all(jnp.isfinite(logits)))
    print("KERNEL_OK")
</pallas_src>

<mosaic_0001>
module attributes {stable_mosaic.version = 11 : i64} {
  func.func @_ffn_kernel(%arg0: i32, %arg1: i32, %arg2: memref<16x32xf32, #tpu.memory_space<vmem>>, %arg3: memref<32x128xbf16, #tpu.memory_space<vmem>>, %arg4: memref<1x128xf32, #tpu.memory_space<vmem>>, %arg5: memref<128x32xbf16, #tpu.memory_space<vmem>>, %arg6: memref<1x32xf32, #tpu.memory_space<vmem>>, %arg7: memref<1x32xf32, #tpu.memory_space<vmem>>, %arg8: memref<1x32xf32, #tpu.memory_space<vmem>>, %arg9: memref<16x32xf32, #tpu.memory_space<vmem>>, %arg10: memref<16x32xf32, #tpu.memory_space<vmem>>) attributes {dimension_semantics = [#tpu.dimension_semantics<parallel>, #tpu.dimension_semantics<arbitrary>], iteration_bounds = array<i64: 1, 1>, scalar_prefetch = 0 : i64, scratch_operands = 1 : i64, tpu.core_type = #tpu.core_type<tc>, window_params = [{transform_indices = @transform_0, window_bounds = array<i64: 16, 32>}, {transform_indices = @transform_1, window_bounds = array<i64: 32, 128>}, {transform_indices = @transform_2, window_bounds = array<i64: 1, 128>}, {transform_indices = @transform_3, window_bounds = array<i64: 128, 32>}, {pipeline_mode = #tpu.pipeline_mode<synchronous>, transform_indices = @transform_4, window_bounds = array<i64: 1, 32>}, {pipeline_mode = #tpu.pipeline_mode<synchronous>, transform_indices = @transform_5, window_bounds = array<i64: 1, 32>}, {pipeline_mode = #tpu.pipeline_mode<synchronous>, transform_indices = @transform_6, window_bounds = array<i64: 1, 32>}, {transform_indices = @transform_7, window_bounds = array<i64: 16, 32>}]} {
    %c0_i32 = arith.constant 0 : i32
    %0 = arith.cmpi eq, %arg1, %c0_i32 : i32
    %1 = arith.extui %0 : i1 to i32
    %c0_i32_0 = arith.constant 0 : i32
    %2 = arith.cmpi ne, %1, %c0_i32_0 : i32
    scf.if %2 {
      %cst_16 = arith.constant 0.000000e+00 : f32
      %21 = vector.broadcast %cst_16 : f32 to vector<16x32xf32>
      %c0_17 = arith.constant 0 : index
      %c0_18 = arith.constant 0 : index
      %22 = vector.load %arg10[%c0_17, %c0_18] : memref<16x32xf32, #tpu.memory_space<vmem>>, vector<16x32xf32>
      tpu.vector_store %arg10[%c0_17, %c0_18], %21 {strides = array<i32>} : memref<16x32xf32, #tpu.memory_space<vmem>>, vector<16x32xf32>,
    } else {
    }
    %c0 = arith.constant 0 : index
    %c0_1 = arith.constant 0 : index
    %3 = vector.load %arg2[%c0, %c0_1] : memref<16x32xf32, #tpu.memory_space<vmem>>, vector<16x32xf32>
    %4 = arith.truncf %3 : vector<16x32xf32> to vector<16x32xbf16>
    %c0_2 = arith.constant 0 : index
    %c0_3 = arith.constant 0 : index
    %5 = vector.load %arg3[%c0_2, %c0_3] : memref<32x128xbf16, #tpu.memory_space<vmem>>, vector<32x128xbf16>
    %cst = arith.constant dense<0.000000e+00> : vector<16x128xf32>
    %6 = tpu.matmul %4, %5, %cst {dimension_numbers = #tpu.dot_dimension_numbers<[1], [0], [0], [1], [0, 0, 1, 1], [], []>} : vector<16x32xbf16>, vector<32x128xbf16>, vector<16x128xf32> -> vector<16x128xf32>
    %c0_4 = arith.constant 0 : index
    %c0_5 = arith.constant 0 : index
    %7 = vector.load %arg4[%c0_4, %c0_5] : memref<1x128xf32, #tpu.memory_space<vmem>>, vector<1x128xf32>
    %8 = vector.broadcast %7 : vector<1x128xf32> to vector<16x128xf32>
    %9 = arith.addf %6, %8 : vector<16x128xf32>
    %cst_6 = arith.constant 0.000000e+00 : f32
    %10 = vector.broadcast %cst_6 : f32 to vector<16x128xf32>
    %11 = arith.maximumf %9, %10 : vector<16x128xf32>
    %c0_7 = arith.constant 0 : index
    %c0_8 = arith.constant 0 : index
    %12 = vector.load %arg10[%c0_7, %c0_8] : memref<16x32xf32, #tpu.memory_space<vmem>>, vector<16x32xf32>
    %13 = arith.truncf %11 : vector<16x128xf32> to vector<16x128xbf16>
    %c0_9 = arith.constant 0 : index
    %c0_10 = arith.constant 0 : index
    %14 = vector.load %arg5[%c0_9, %c0_10] : memref<128x32xbf16, #tpu.memory_space<vmem>>, vector<128x32xbf16>
    %cst_11 = arith.constant dense<0.000000e+00> : vector<16x32xf32>
    %15 = tpu.matmul %13, %14, %cst_11 {dimension_numbers = #tpu.dot_dimension_numbers<[1], [0], [0], [1], [0, 0, 1, 1], [], []>} : vector<16x128xbf16>, vector<128x32xbf16>, vector<16x32xf32> -> vector<16x32xf32>
    %16 = arith.addf %12, %15 : vector<16x32xf32>
    %c0_12 = arith.constant 0 : index
    %c0_13 = arith.constant 0 : index
    %17 = vector.load %arg10[%c0_12, %c0_13] : memref<16x32xf32, #tpu.memory_space<vmem>>, vector<16x32xf32>
    tpu.vector_store %arg10[%c0_12, %c0_13], %16 {strides = array<i32>} : memref<16x32xf32, #tpu.memory_space<vmem>>, vector<16x32xf32>,
    %c0_i32_14 = arith.constant 0 : i32
    %18 = arith.cmpi eq, %arg1, %c0_i32_14 : i32
    %19 = arith.extui %18 : i1 to i32
    %c0_i32_15 = arith.constant 0 : i32
    %20 = arith.cmpi ne, %19, %c0_i32_15 : i32
    scf.if %20 {
      %c0_16 = arith.constant 0 : index
      %c0_17 = arith.constant 0 : index
      %21 = vector.load %arg10[%c0_16, %c0_17] : memref<16x32xf32, #tpu.memory_space<vmem>>, vector<16x32xf32>
      %c0_18 = arith.constant 0 : index
      %c0_19 = arith.constant 0 : index
      %22 = vector.load %arg6[%c0_18, %c0_19] : memref<1x32xf32, #tpu.memory_space<vmem>>, vector<1x32xf32>
      %23 = vector.broadcast %22 : vector<1x32xf32> to vector<16x32xf32>
      %24 = arith.addf %21, %23 : vector<16x32xf32>
      %c0_20 = arith.constant 0 : index
      %c0_21 = arith.constant 0 : index
      %25 = vector.load %arg2[%c0_20, %c0_21] : memref<16x32xf32, #tpu.memory_space<vmem>>, vector<16x32xf32>
      %c0_22 = arith.constant 0 : index
      %c0_23 = arith.constant 0 : index
      %26 = vector.load %arg7[%c0_22, %c0_23] : memref<1x32xf32, #tpu.memory_space<vmem>>, vector<1x32xf32>
      %c0_24 = arith.constant 0 : index
      %c0_25 = arith.constant 0 : index
      %27 = vector.load %arg8[%c0_24, %c0_25] : memref<1x32xf32, #tpu.memory_space<vmem>>, vector<1x32xf32>
      %28 = arith.addf %25, %24 : vector<16x32xf32>
      %cst_26 = arith.constant dense<0.000000e+00> : vector<16xf32>
      %29 = vector.multi_reduction <add>, %28, %cst_26 [1] : vector<16x32xf32> to vector<16xf32>
      %30 = vector.shape_cast %29 : vector<16xf32> to vector<16x1xf32>
      %cst_27 = arith.constant 3.200000e+01 : f32
      %31 = vector.broadcast %cst_27 : f32 to vector<16x1xf32>
      %32 = arith.divf %30, %31 : vector<16x1xf32>
      %33 = vector.broadcast %32 : vector<16x1xf32> to vector<16x32xf32>
      %34 = arith.subf %28, %33 : vector<16x32xf32>
      %35 = arith.mulf %34, %34 : vector<16x32xf32>
      %cst_28 = arith.constant dense<0.000000e+00> : vector<16xf32>
      %36 = vector.multi_reduction <add>, %35, %cst_28 [1] : vector<16x32xf32> to vector<16xf32>
      %37 = vector.shape_cast %36 : vector<16xf32> to vector<16x1xf32>
      %cst_29 = arith.constant 3.200000e+01 : f32
      %38 = vector.broadcast %cst_29 : f32 to vector<16x1xf32>
      %39 = arith.divf %37, %38 : vector<16x1xf32>
      %cst_30 = arith.constant 9.99999974E-6 : f32
      %40 = vector.broadcast %cst_30 : f32 to vector<16x1xf32>
      %41 = arith.addf %39, %40 : vector<16x1xf32>
      %42 = math.rsqrt %41 : vector<16x1xf32>
      %43 = vector.broadcast %42 : vector<16x1xf32> to vector<16x32xf32>
      %44 = arith.mulf %34, %43 : vector<16x32xf32>
      %45 = vector.broadcast %26 : vector<1x32xf32> to vector<16x32xf32>
      %46 = arith.mulf %44, %45 : vector<16x32xf32>
      %47 = vector.broadcast %27 : vector<1x32xf32> to vector<16x32xf32>
      %48 = arith.addf %46, %47 : vector<16x32xf32>
      %c0_31 = arith.constant 0 : index
      %c0_32 = arith.constant 0 : index
      %49 = vector.load %arg9[%c0_31, %c0_32] : memref<16x32xf32, #tpu.memory_space<vmem>>, vector<16x32xf32>
      tpu.vector_store %arg9[%c0_31, %c0_32], %48 {strides = array<i32>} : memref<16x32xf32, #tpu.memory_space<vmem>>, vector<16x32xf32>,
    } else {
    }
    return
  }
  func.func @transform_0(%arg0: i32, %arg1: i32) -> (i32, i32) {
    %c0_i32 = arith.constant 0 : i32
    %c0_i32_0 = arith.constant 0 : i32
    return %arg0, %c0_i32 : i32, i32
  }
  func.func @transform_1(%arg0: i32, %arg1: i32) -> (i32, i32) {
    %c0_i32 = arith.constant 0 : i32
    %c0_i32_0 = arith.constant 0 : i32
    return %c0_i32, %arg1 : i32, i32
  }
  func.func @transform_2(%arg0: i32, %arg1: i32) -> (i32, i32) {
    %c0_i32 = arith.constant 0 : i32
    %c0_i32_0 = arith.constant 0 : i32
    return %c0_i32, %arg1 : i32, i32
  }
  func.func @transform_3(%arg0: i32, %arg1: i32) -> (i32, i32) {
    %c0_i32 = arith.constant 0 : i32
    %c0_i32_0 = arith.constant 0 : i32
    return %arg1, %c0_i32 : i32, i32
  }
  func.func @transform_4(%arg0: i32, %arg1: i32) -> (i32, i32) {
    %c0_i32 = arith.constant 0 : i32
    %c0_i32_0 = arith.constant 0 : i32
    %c0_i32_1 = arith.constant 0 : i32
    return %c0_i32, %c0_i32_0 : i32, i32
  }
  func.func @transform_5(%arg0: i32, %arg1: i32) -> (i32, i32) {
    %c0_i32 = arith.constant 0 : i32
    %c0_i32_0 = arith.constant 0 : i32
    %c0_i32_1 = arith.constant 0 : i32
    return %c0_i32, %c0_i32_0 : i32, i32
  }
  func.func @transform_6(%arg0: i32, %arg1: i32) -> (i32, i32) {
    %c0_i32 = arith.constant 0 : i32
    %c0_i32_0 = arith.constant 0 : i32
    %c0_i32_1 = arith.constant 0 : i32
    return %c0_i32, %c0_i32_0 : i32, i32
  }
  func.func @transform_7(%arg0: i32, %arg1: i32) -> (i32, i32) {
    %c0_i32 = arith.constant 0 : i32
    %c0_i32_0 = arith.constant 0 : i32
    return %arg0, %c0_i32 : i32, i32
  }
}

module attributes {stable_mosaic.version = 11 : i64} {
  func.func @_qkv_proj_kernel(%arg0: i32, %arg1: i32, %arg2: memref<1x8x32xf32, #tpu.memory_space<vmem>>, %arg3: memref<32x64xbf16, #tpu.memory_space<vmem>>, %arg4: memref<32x64xbf16, #tpu.memory_space<vmem>>, %arg5: memref<32x64xbf16, #tpu.memory_space<vmem>>, %arg6: memref<1x4x8x16xbf16, #tpu.memory_space<vmem>>, %arg7: memref<1x4x8x16xbf16, #tpu.memory_space<vmem>>, %arg8: memref<1x4x8x16xbf16, #tpu.memory_space<vmem>>) attributes {dimension_semantics = [#tpu.dimension_semantics<parallel>, #tpu.dimension_semantics<parallel>], iteration_bounds = array<i64: 2, 1>, scalar_prefetch = 0 : i64, scratch_operands = 0 : i64, tpu.core_type = #tpu.core_type<tc>, window_params = [{transform_indices = @transform_0, window_bounds = array<i64: 1, 8, 32>}, {pipeline_mode = #tpu.pipeline_mode<synchronous>, transform_indices = @transform_1, window_bounds = array<i64: 32, 64>}, {pipeline_mode = #tpu.pipeline_mode<synchronous>, transform_indices = @transform_2, window_bounds = array<i64: 32, 64>}, {pipeline_mode = #tpu.pipeline_mode<synchronous>, transform_indices = @transform_3, window_bounds = array<i64: 32, 64>}, {transform_indices = @transform_4, window_bounds = array<i64: 1, 4, 8, 16>}, {transform_indices = @transform_5, window_bounds = array<i64: 1, 4, 8, 16>}, {transform_indices = @transform_6, window_bounds = array<i64: 1, 4, 8, 16>}]} {
    %c0 = arith.constant 0 : index
    %c0_0 = arith.constant 0 : index
    %c0_1 = arith.constant 0 : index
    %0 = vector.load %arg2[%c0, %c0_0, %c0_1] : memref<1x8x32xf32, #tpu.memory_space<vmem>>, vector<1x8x32xf32>
    %1 = vector.shape_cast %0 : vector<1x8x32xf32> to vector<8x32xf32>
    %2 = arith.truncf %1 : vector<8x32xf32> to vector<8x32xbf16>
    %c0_2 = arith.constant 0 : index
    %c0_3 = arith.constant 0 : index
    %3 = vector.load %arg3[%c0_2, %c0_3] : memref<32x64xbf16, #tpu.memory_space<vmem>>, vector<32x64xbf16>
    %cst = arith.constant dense<0.000000e+00> : vector<8x64xf32>
    %4 = tpu.matmul %2, %3, %cst {dimension_numbers = #tpu.dot_dimension_numbers<[1], [0], [0], [1], [0, 0, 1, 1], [], []>} : vector<8x32xbf16>, vector<32x64xbf16>, vector<8x64xf32> -> vector<8x64xf32>
    %c0_4 = arith.constant 0 : index
    %c0_5 = arith.constant 0 : index
    %5 = vector.load %arg4[%c0_4, %c0_5] : memref<32x64xbf16, #tpu.memory_space<vmem>>, vector<32x64xbf16>
    %cst_6 = arith.constant dense<0.000000e+00> : vector<8x64xf32>
    %6 = tpu.matmul %2, %5, %cst_6 {dimension_numbers = #tpu.dot_dimension_numbers<[1], [0], [0], [1], [0, 0, 1, 1], [], []>} : vector<8x32xbf16>, vector<32x64xbf16>, vector<8x64xf32> -> vector<8x64xf32>
    %c0_7 = arith.constant 0 : index
    %c0_8 = arith.constant 0 : index
    %7 = vector.load %arg5[%c0_7, %c0_8] : memref<32x64xbf16, #tpu.memory_space<vmem>>, vector<32x64xbf16>
    %cst_9 = arith.constant dense<0.000000e+00> : vector<8x64xf32>
    %8 = tpu.matmul %2, %7, %cst_9 {dimension_numbers = #tpu.dot_dimension_numbers<[1], [0], [0], [1], [0, 0, 1, 1], [], []>} : vector<8x32xbf16>, vector<32x64xbf16>, vector<8x64xf32> -> vector<8x64xf32>
    %9 = vector.extract_strided_slice %4 {offsets = [0, 0], sizes = [8, 16], strides = [1, 1]} : vector<8x64xf32> to vector<8x16xf32>
    %10 = arith.truncf %9 : vector<8x16xf32> to vector<8x16xbf16>
    %c0_10 = arith.constant 0 : index
    %c0_11 = arith.constant 0 : index
    %c0_12 = arith.constant 0 : index
    %c0_13 = arith.constant 0 : index
    %11 = vector.load %arg6[%c0_10, %c0_11, %c0_12, %c0_13] : memref<1x4x8x16xbf16, #tpu.memory_space<vmem>>, vector<1x1x8x16xbf16>
    %12 = vector.shape_cast %11 : vector<1x1x8x16xbf16> to vector<8x16xbf16>
    %13 = vector.shape_cast %10 : vector<8x16xbf16> to vector<1x1x8x16xbf16>
    tpu.vector_store %arg6[%c0_10, %c0_11, %c0_12, %c0_13], %13 {strides = array<i32>} : memref<1x4x8x16xbf16, #tpu.memory_space<vmem>>, vector<1x1x8x16xbf16>,
    %14 = vector.extract_strided_slice %6 {offsets = [0, 0], sizes = [8, 16], strides = [1, 1]} : vector<8x64xf32> to vector<8x16xf32>
    %15 = arith.truncf %14 : vector<8x16xf32> to vector<8x16xbf16>
    %c0_14 = arith.constant 0 : index
    %c0_15 = arith.constant 0 : index
    %c0_16 = arith.constant 0 : index
    %c0_17 = arith.constant 0 : index
    %16 = vector.load %arg7[%c0_14, %c0_15, %c0_16, %c0_17] : memref<1x4x8x16xbf16, #tpu.memory_space<vmem>>, vector<1x1x8x16xbf16>
    %17 = vector.shape_cast %16 : vector<1x1x8x16xbf16> to vector<8x16xbf16>
    %18 = vector.shape_cast %15 : vector<8x16xbf16> to vector<1x1x8x16xbf16>
    tpu.vector_store %arg7[%c0_14, %c0_15, %c0_16, %c0_17], %18 {strides = array<i32>} : memref<1x4x8x16xbf16, #tpu.memory_space<vmem>>, vector<1x1x8x16xbf16>,
    %19 = vector.extract_strided_slice %8 {offsets = [0, 0], sizes = [8, 16], strides = [1, 1]} : vector<8x64xf32> to vector<8x16xf32>
    %20 = arith.truncf %19 : vector<8x16xf32> to vector<8x16xbf16>
    %c0_18 = arith.constant 0 : index
    %c0_19 = arith.constant 0 : index
    %c0_20 = arith.constant 0 : index
    %c0_21 = arith.constant 0 : index
    %21 = vector.load %arg8[%c0_18, %c0_19, %c0_20, %c0_21] : memref<1x4x8x16xbf16, #tpu.memory_space<vmem>>, vector<1x1x8x16xbf16>
    %22 = vector.shape_cast %21 : vector<1x1x8x16xbf16> to vector<8x16xbf16>
    %23 = vector.shape_cast %20 : vector<8x16xbf16> to vector<1x1x8x16xbf16>
    tpu.vector_store %arg8[%c0_18, %c0_19, %c0_20, %c0_21], %23 {strides = array<i32>} : memref<1x4x8x16xbf16, #tpu.memory_space<vmem>>, vector<1x1x8x16xbf16>,
    %24 = vector.extract_strided_slice %4 {offsets = [0, 16], sizes = [8, 16], strides = [1, 1]} : vector<8x64xf32> to vector<8x16xf32>
    %25 = arith.truncf %24 : vector<8x16xf32> to vector<8x16xbf16>
    %c0_22 = arith.constant 0 : index
    %c1 = arith.constant 1 : index
    %c0_23 = arith.constant 0 : index
    %c0_24 = arith.constant 0 : index
    %26 = vector.load %arg6[%c0_22, %c1, %c0_23, %c0_24] : memref<1x4x8x16xbf16, #tpu.memory_space<vmem>>, vector<1x1x8x16xbf16>
    %27 = vector.shape_cast %26 : vector<1x1x8x16xbf16> to vector<8x16xbf16>
    %28 = vector.shape_cast %25 : vector<8x16xbf16> to vector<1x1x8x16xbf16>
    tpu.vector_store %arg6[%c0_22, %c1, %c0_23, %c0_24], %28 {strides = array<i32>} : memref<1x4x8x16xbf16, #tpu.memory_space<vmem>>, vector<1x1x8x16xbf16>,
    %29 = vector.extract_strided_slice %6 {offsets = [0, 16], sizes = [8, 16], strides = [1, 1]} : vector<8x64xf32> to vector<8x16xf32>
    %30 = arith.truncf %29 : vector<8x16xf32> to vector<8x16xbf16>
    %c0_25 = arith.constant 0 : index
    %c1_26 = arith.constant 1 : index
    %c0_27 = arith.constant 0 : index
    %c0_28 = arith.constant 0 : index
    %31 = vector.load %arg7[%c0_25, %c1_26, %c0_27, %c0_28] : memref<1x4x8x16xbf16, #tpu.memory_space<vmem>>, vector<1x1x8x16xbf16>
    %32 = vector.shape_cast %31 : vector<1x1x8x16xbf16> to vector<8x16xbf16>
    %33 = vector.shape_cast %30 : vector<8x16xbf16> to vector<1x1x8x16xbf16>
    tpu.vector_store %arg7[%c0_25, %c1_26, %c0_27, %c0_28], %33 {strides = array<i32>} : memref<1x4x8x16xbf16, #tpu.memory_space<vmem>>, vector<1x1x8x16xbf16>,
    %34 = vector.extract_strided_slice %8 {offsets = [0, 16], sizes = [8, 16], strides = [1, 1]} : vector<8x64xf32> to vector<8x16xf32>
    %35 = arith.truncf %34 : vector<8x16xf32> to vector<8x16xbf16>
    %c0_29 = arith.constant 0 : index
    %c1_30 = arith.constant 1 : index
    %c0_31 = arith.constant 0 : index
    %c0_32 = arith.constant 0 : index
    %36 = vector.load %arg8[%c0_29, %c1_30, %c0_31, %c0_32] : memref<1x4x8x16xbf16, #tpu.memory_space<vmem>>, vector<1x1x8x16xbf16>
    %37 = vector.shape_cast %36 : vector<1x1x8x16xbf16> to vector<8x16xbf16>
    %38 = vector.shape_cast %35 : vector<8x16xbf16> to vector<1x1x8x16xbf16>
    tpu.vector_store %arg8[%c0_29, %c1_30, %c0_31, %c0_32], %38 {strides = array<i32>} : memref<1x4x8x16xbf16, #tpu.memory_space<vmem>>, vector<1x1x8x16xbf16>,
    %39 = vector.extract_strided_slice %4 {offsets = [0, 32], sizes = [8, 16], strides = [1, 1]} : vector<8x64xf32> to vector<8x16xf32>
    %40 = arith.truncf %39 : vector<8x16xf32> to vector<8x16xbf16>
    %c0_33 = arith.constant 0 : index
    %c2 = arith.constant 2 : index
    %c0_34 = arith.constant 0 : index
    %c0_35 = arith.constant 0 : index
    %41 = vector.load %arg6[%c0_33, %c2, %c0_34, %c0_35] : memref<1x4x8x16xbf16, #tpu.memory_space<vmem>>, vector<1x1x8x16xbf16>
    %42 = vector.shape_cast %41 : vector<1x1x8x16xbf16> to vector<8x16xbf16>
    %43 = vector.shape_cast %40 : vector<8x16xbf16> to vector<1x1x8x16xbf16>
    tpu.vector_store %arg6[%c0_33, %c2, %c0_34, %c0_35], %43 {strides = array<i32>} : memref<1x4x8x16xbf16, #tpu.memory_space<vmem>>, vector<1x1x8x16xbf16>,
    %44 = vector.extract_strided_slice %6 {offsets = [0, 32], sizes = [8, 16], strides = [1, 1]} : vector<8x64xf32> to vector<8x16xf32>
    %45 = arith.truncf %44 : vector<8x16xf32> to vector<8x16xbf16>
    %c0_36 = arith.constant 0 : index
    %c2_37 = arith.constant 2 : index
    %c0_38 = arith.constant 0 : index
    %c0_39 = arith.constant 0 : index
    %46 = vector.load %arg7[%c0_36, %c2_37, %c0_38, %c0_39] : memref<1x4x8x16xbf16, #tpu.memory_space<vmem>>, vector<1x1x8x16xbf16>
    %47 = vector.shape_cast %46 : vector<1x1x8x16xbf16> to vector<8x16xbf16>
    %48 = vector.shape_cast %45 : vector<8x16xbf16> to vector<1x1x8x16xbf16>
    tpu.vector_store %arg7[%c0_36, %c2_37, %c0_38, %c0_39], %48 {strides = array<i32>} : memref<1x4x8x16xbf16, #tpu.memory_space<vmem>>, vector<1x1x8x16xbf16>,
    %49 = vector.extract_strided_slice %8 {offsets = [0, 32], sizes = [8, 16], strides = [1, 1]} : vector<8x64xf32> to vector<8x16xf32>
    %50 = arith.truncf %49 : vector<8x16xf32> to vector<8x16xbf16>
    %c0_40 = arith.constant 0 : index
    %c2_41 = arith.constant 2 : index
    %c0_42 = arith.constant 0 : index
    %c0_43 = arith.constant 0 : index
    %51 = vector.load %arg8[%c0_40, %c2_41, %c0_42, %c0_43] : memref<1x4x8x16xbf16, #tpu.memory_space<vmem>>, vector<1x1x8x16xbf16>
    %52 = vector.shape_cast %51 : vector<1x1x8x16xbf16> to vector<8x16xbf16>
    %53 = vector.shape_cast %50 : vector<8x16xbf16> to vector<1x1x8x16xbf16>
    tpu.vector_store %arg8[%c0_40, %c2_41, %c0_42, %c0_43], %53 {strides = array<i32>} : memref<1x4x8x16xbf16, #tpu.memory_space<vmem>>, vector<1x1x8x16xbf16>,
    %54 = vector.extract_strided_slice %4 {offsets = [0, 48], sizes = [8, 16], strides = [1, 1]} : vector<8x64xf32> to vector<8x16xf32>
    %55 = arith.truncf %54 : vector<8x16xf32> to vector<8x16xbf16>
    %c0_44 = arith.constant 0 : index
    %c3 = arith.constant 3 : index
    %c0_45 = arith.constant 0 : index
    %c0_46 = arith.constant 0 : index
    %56 = vector.load %arg6[%c0_44, %c3, %c0_45, %c0_46] : memref<1x4x8x16xbf16, #tpu.memory_space<vmem>>, vector<1x1x8x16xbf16>
    %57 = vector.shape_cast %56 : vector<1x1x8x16xbf16> to vector<8x16xbf16>
    %58 = vector.shape_cast %55 : vector<8x16xbf16> to vector<1x1x8x16xbf16>
    tpu.vector_store %arg6[%c0_44, %c3, %c0_45, %c0_46], %58 {strides = array<i32>} : memref<1x4x8x16xbf16, #tpu.memory_space<vmem>>, vector<1x1x8x16xbf16>,
    %59 = vector.extract_strided_slice %6 {offsets = [0, 48], sizes = [8, 16], strides = [1, 1]} : vector<8x64xf32> to vector<8x16xf32>
    %60 = arith.truncf %59 : vector<8x16xf32> to vector<8x16xbf16>
    %c0_47 = arith.constant 0 : index
    %c3_48 = arith.constant 3 : index
    %c0_49 = arith.constant 0 : index
    %c0_50 = arith.constant 0 : index
    %61 = vector.load %arg7[%c0_47, %c3_48, %c0_49, %c0_50] : memref<1x4x8x16xbf16, #tpu.memory_space<vmem>>, vector<1x1x8x16xbf16>
    %62 = vector.shape_cast %61 : vector<1x1x8x16xbf16> to vector<8x16xbf16>
    %63 = vector.shape_cast %60 : vector<8x16xbf16> to vector<1x1x8x16xbf16>
    tpu.vector_store %arg7[%c0_47, %c3_48, %c0_49, %c0_50], %63 {strides = array<i32>} : memref<1x4x8x16xbf16, #tpu.memory_space<vmem>>, vector<1x1x8x16xbf16>,
    %64 = vector.extract_strided_slice %8 {offsets = [0, 48], sizes = [8, 16], strides = [1, 1]} : vector<8x64xf32> to vector<8x16xf32>
    %65 = arith.truncf %64 : vector<8x16xf32> to vector<8x16xbf16>
    %c0_51 = arith.constant 0 : index
    %c3_52 = arith.constant 3 : index
    %c0_53 = arith.constant 0 : index
    %c0_54 = arith.constant 0 : index
    %66 = vector.load %arg8[%c0_51, %c3_52, %c0_53, %c0_54] : memref<1x4x8x16xbf16, #tpu.memory_space<vmem>>, vector<1x1x8x16xbf16>
    %67 = vector.shape_cast %66 : vector<1x1x8x16xbf16> to vector<8x16xbf16>
    %68 = vector.shape_cast %65 : vector<8x16xbf16> to vector<1x1x8x16xbf16>
    tpu.vector_store %arg8[%c0_51, %c3_52, %c0_53, %c0_54], %68 {strides = array<i32>} : memref<1x4x8x16xbf16, #tpu.memory_space<vmem>>, vector<1x1x8x16xbf16>,
    return
  }
  func.func @transform_0(%arg0: i32, %arg1: i32) -> (i32, i32, i32) {
    %c0_i32 = arith.constant 0 : i32
    %c0_i32_0 = arith.constant 0 : i32
    return %arg0, %arg1, %c0_i32 : i32, i32, i32
  }
  func.func @transform_1(%arg0: i32, %arg1: i32) -> (i32, i32) {
    %c0_i32 = arith.constant 0 : i32
    %c0_i32_0 = arith.constant 0 : i32
    %c0_i32_1 = arith.constant 0 : i32
    return %c0_i32, %c0_i32_0 : i32, i32
  }
  func.func @transform_2(%arg0: i32, %arg1: i32) -> (i32, i32) {
    %c0_i32 = arith.constant 0 : i32
    %c0_i32_0 = arith.constant 0 : i32
    %c0_i32_1 = arith.constant 0 : i32
    return %c0_i32, %c0_i32_0 : i32, i32
  }
  func.func @transform_3(%arg0: i32, %arg1: i32) -> (i32, i32) {
    %c0_i32 = arith.constant 0 : i32
    %c0_i32_0 = arith.constant 0 : i32
    %c0_i32_1 = arith.constant 0 : i32
    return %c0_i32, %c0_i32_0 : i32, i32
  }
  func.func @transform_4(%arg0: i32, %arg1: i32) -> (i32, i32, i32, i32) {
    %c0_i32 = arith.constant 0 : i32
    %c0_i32_0 = arith.constant 0 : i32
    %c0_i32_1 = arith.constant 0 : i32
    return %arg0, %c0_i32, %arg1, %c0_i32_0 : i32, i32, i32, i32
  }
  func.func @transform_5(%arg0: i32, %arg1: i32) -> (i32, i32, i32, i32) {
    %c0_i32 = arith.constant 0 : i32
    %c0_i32_0 = arith.constant 0 : i32
    %c0_i32_1 = arith.constant 0 : i32
    return %arg0, %c0_i32, %arg1, %c0_i32_0 : i32, i32, i32, i32
  }
  func.func @transform_6(%arg0: i32, %arg1: i32) -> (i32, i32, i32, i32) {
    %c0_i32 = arith.constant 0 : i32
    %c0_i32_0 = arith.constant 0 : i32
    %c0_i32_1 = arith.constant 0 : i32
    return %arg0, %c0_i32, %arg1, %c0_i32_0 : i32, i32, i32, i32
  }
}

module attributes {stable_mosaic.version = 11 : i64} {
  func.func @_flash_mha_kernel(%arg0: i32, %arg1: i32, %arg2: i32, %arg3: memref<1x8x32xf32, #tpu.memory_space<vmem>>, %arg4: memref<1x4x8x16xbf16, #tpu.memory_space<vmem>>, %arg5: memref<1x4x8x16xbf16, #tpu.memory_space<vmem>>, %arg6: memref<1x4x8x16xbf16, #tpu.memory_space<vmem>>, %arg7: memref<64x32xbf16, #tpu.memory_space<vmem>>, %arg8: memref<1x32xf32, #tpu.memory_space<vmem>>, %arg9: memref<1x32xf32, #tpu.memory_space<vmem>>, %arg10: memref<1x8x32xf32, #tpu.memory_space<vmem>>, %arg11: memref<4x8x1xf32, #tpu.memory_space<vmem>>, %arg12: memref<4x8x1xf32, #tpu.memory_space<vmem>>, %arg13: memref<4x8x16xf32, #tpu.memory_space<vmem>>, %arg14: memref<8x64xf32, #tpu.memory_space<vmem>>) attributes {dimension_semantics = [#tpu.dimension_semantics<parallel>, #tpu.dimension_semantics<parallel>, #tpu.dimension_semantics<arbitrary>], iteration_bounds = array<i64: 2, 1, 1>, scalar_prefetch = 0 : i64, scratch_operands = 4 : i64, tpu.core_type = #tpu.core_type<tc>, window_params = [{transform_indices = @transform_0, window_bounds = array<i64: 1, 8, 32>}, {transform_indices = @transform_1, window_bounds = array<i64: 1, 4, 8, 16>}, {transform_indices = @transform_2, window_bounds = array<i64: 1, 4, 8, 16>}, {transform_indices = @transform_3, window_bounds = array<i64: 1, 4, 8, 16>}, {pipeline_mode = #tpu.pipeline_mode<synchronous>, transform_indices = @transform_4, window_bounds = array<i64: 64, 32>}, {pipeline_mode = #tpu.pipeline_mode<synchronous>, transform_indices = @transform_5, window_bounds = array<i64: 1, 32>}, {pipeline_mode = #tpu.pipeline_mode<synchronous>, transform_indices = @transform_6, window_bounds = array<i64: 1, 32>}, {transform_indices = @transform_7, window_bounds = array<i64: 1, 8, 32>}]} {
    %c8_i32 = arith.constant 8 : i32
    %0 = arith.muli %arg1, %c8_i32 : i32
    %c8_i32_0 = arith.constant 8 : i32
    %1 = arith.muli %arg2, %c8_i32_0 : i32
    %c0_i32 = arith.constant 0 : i32
    %2 = arith.cmpi eq, %arg2, %c0_i32 : i32
    %3 = arith.extui %2 : i1 to i32
    %c0_i32_1 = arith.constant 0 : i32
    %4 = arith.cmpi ne, %3, %c0_i32_1 : i32
    scf.if %4 {
      %cst = arith.constant -1.000000e+30 : f32
      %12 = vector.broadcast %cst : f32 to vector<4x8x1xf32>
      %c0 = arith.constant 0 : index
      %c0_5 = arith.constant 0 : index
      %c0_6 = arith.constant 0 : index
      %13 = vector.load %arg11[%c0, %c0_5, %c0_6] : memref<4x8x1xf32, #tpu.memory_space<vmem>>, vector<4x8x1xf32>
      tpu.vector_store %arg11[%c0, %c0_5, %c0_6], %12 {strides = array<i32>} : memref<4x8x1xf32, #tpu.memory_space<vmem>>, vector<4x8x1xf32>,
      %cst_7 = arith.constant 0.000000e+00 : f32
      %14 = vector.broadcast %cst_7 : f32 to vector<4x8x1xf32>
      %c0_8 = arith.constant 0 : index
      %c0_9 = arith.constant 0 : index
      %c0_10 = arith.constant 0 : index
      %15 = vector.load %arg12[%c0_8, %c0_9, %c0_10] : memref<4x8x1xf32, #tpu.memory_space<vmem>>, vector<4x8x1xf32>
      tpu.vector_store %arg12[%c0_8, %c0_9, %c0_10], %14 {strides = array<i32>} : memref<4x8x1xf32, #tpu.memory_space<vmem>>, vector<4x8x1xf32>,
      %cst_11 = arith.constant 0.000000e+00 : f32
      %16 = vector.broadcast %cst_11 : f32 to vector<4x8x16xf32>
      %c0_12 = arith.constant 0 : index
      %c0_13 = arith.constant 0 : index
      %c0_14 = arith.constant 0 : index
      %17 = vector.load %arg13[%c0_12, %c0_13, %c0_14] : memref<4x8x16xf32, #tpu.memory_space<vmem>>, vector<4x8x16xf32>
      tpu.vector_store %arg13[%c0_12, %c0_13, %c0_14], %16 {strides = array<i32>} : memref<4x8x16xf32, #tpu.memory_space<vmem>>, vector<4x8x16xf32>,
    } else {
    }
    %c7_i32 = arith.constant 7 : i32
    %5 = arith.addi %0, %c7_i32 : i32
    %6 = arith.cmpi sle, %1, %5 : i32
    %7 = arith.extui %6 : i1 to i32
    %c0_i32_2 = arith.constant 0 : i32
    %8 = arith.cmpi ne, %7, %c0_i32_2 : i32
    scf.if %8 {
      %c0 = arith.constant 0 : index
      %c0_5 = arith.constant 0 : index
      %c0_6 = arith.constant 0 : index
      %c0_7 = arith.constant 0 : index
      %12 = vector.load %arg4[%c0, %c0_5, %c0_6, %c0_7] : memref<1x4x8x16xbf16, #tpu.memory_space<vmem>>, vector<1x4x8x16xbf16>
      %13 = vector.shape_cast %12 : vector<1x4x8x16xbf16> to vector<4x8x16xbf16>
      %c0_8 = arith.constant 0 : index
      %c0_9 = arith.constant 0 : index
      %c0_10 = arith.constant 0 : index
      %c0_11 = arith.constant 0 : index
      %14 = vector.load %arg5[%c0_8, %c0_9, %c0_10, %c0_11] : memref<1x4x8x16xbf16, #tpu.memory_space<vmem>>, vector<1x4x8x16xbf16>
      %15 = vector.shape_cast %14 : vector<1x4x8x16xbf16> to vector<4x8x16xbf16>
      %c0_12 = arith.constant 0 : index
      %c0_13 = arith.constant 0 : index
      %c0_14 = arith.constant 0 : index
      %c0_15 = arith.constant 0 : index
      %16 = vector.load %arg6[%c0_12, %c0_13, %c0_14, %c0_15] : memref<1x4x8x16xbf16, #tpu.memory_space<vmem>>, vector<1x4x8x16xbf16>
      %17 = vector.shape_cast %16 : vector<1x4x8x16xbf16> to vector<4x8x16xbf16>
      %cst = arith.constant dense<0.000000e+00> : vector<4x8x8xf32>
      %18 = tpu.matmul %13, %15, %cst {dimension_numbers = #tpu.dot_dimension_numbers<[2], [2], [1], [1], [0, 0, 0, 1, 1, 1], [0], [0]>} : vector<4x8x16xbf16>, vector<4x8x16xbf16>, vector<4x8x8xf32> -> vector<4x8x8xf32>
      %cst_16 = arith.constant 0.176776692 : f32
      %19 = vector.broadcast %cst_16 : f32 to vector<4x8x8xf32>
      %20 = arith.mulf %18, %19 : vector<4x8x8xf32>
      %21 = tpu.iota {dimensions = array<i32: 1>} : vector<4x8x8xi32>
      %22 = vector.broadcast %0 : i32 to vector<4x8x8xi32>
      %23 = arith.addi %22, %21 : vector<4x8x8xi32>
      %24 = tpu.iota {dimensions = array<i32: 2>} : vector<4x8x8xi32>
      %25 = vector.broadcast %1 : i32 to vector<4x8x8xi32>
      %26 = arith.addi %25, %24 : vector<4x8x8xi32>
      %27 = arith.cmpi sgt, %26, %23 : vector<4x8x8xi32>
      %cst_17 = arith.constant -1.000000e+30 : f32
      %28 = vector.broadcast %cst_17 : f32 to vector<4x8x8xf32>
      %29 = arith.select %27, %28, %20 : vector<4x8x8xi1>, vector<4x8x8xf32>
      %c0_18 = arith.constant 0 : index
      %c0_19 = arith.constant 0 : index
      %c0_20 = arith.constant 0 : index
      %30 = vector.load %arg11[%c0_18, %c0_19, %c0_20] : memref<4x8x1xf32, #tpu.memory_space<vmem>>, vector<4x8x1xf32>
      %cst_21 = arith.constant dense<0xFF800000> : vector<4x8xf32>
      %31 = vector.multi_reduction <maximumf>, %29, %cst_21 [2] : vector<4x8x8xf32> to vector<4x8xf32>
      %32 = vector.shape_cast %31 : vector<4x8xf32> to vector<4x8x1xf32>
      %33 = arith.maximumf %30, %32 : vector<4x8x1xf32>
      %34 = arith.subf %30, %33 : vector<4x8x1xf32>
      %35 = math.exp %34 : vector<4x8x1xf32>
      %36 = vector.broadcast %33 : vector<4x8x1xf32> to vector<4x8x8xf32>
      %37 = arith.subf %29, %36 : vector<4x8x8xf32>
      %38 = math.exp %37 : vector<4x8x8xf32>
      %c0_22 = arith.constant 0 : index
      %c0_23 = arith.constant 0 : index
      %c0_24 = arith.constant 0 : index
      %39 = vector.load %arg12[%c0_22, %c0_23, %c0_24] : memref<4x8x1xf32, #tpu.memory_space<vmem>>, vector<4x8x1xf32>
      %40 = arith.mulf %35, %39 : vector<4x8x1xf32>
      %cst_25 = arith.constant dense<0.000000e+00> : vector<4x8xf32>
      %41 = vector.multi_reduction <add>, %38, %cst_25 [2] : vector<4x8x8xf32> to vector<4x8xf32>
      %42 = vector.shape_cast %41 : vector<4x8xf32> to vector<4x8x1xf32>
      %43 = arith.addf %40, %42 : vector<4x8x1xf32>
      %c0_26 = arith.constant 0 : index
      %c0_27 = arith.constant 0 : index
      %c0_28 = arith.constant 0 : index
      %44 = vector.load %arg12[%c0_26, %c0_27, %c0_28] : memref<4x8x1xf32, #tpu.memory_space<vmem>>, vector<4x8x1xf32>
      tpu.vector_store %arg12[%c0_26, %c0_27, %c0_28], %43 {strides = array<i32>} : memref<4x8x1xf32, #tpu.memory_space<vmem>>, vector<4x8x1xf32>,
      %45 = arith.truncf %38 : vector<4x8x8xf32> to vector<4x8x8xbf16>
      %cst_29 = arith.constant dense<0.000000e+00> : vector<4x8x16xf32>
      %46 = tpu.matmul %45, %17, %cst_29 {dimension_numbers = #tpu.dot_dimension_numbers<[2], [1], [1], [2], [0, 0, 0, 1, 1, 2], [0], [0]>} : vector<4x8x8xbf16>, vector<4x8x16xbf16>, vector<4x8x16xf32> -> vector<4x8x16xf32>
      %c0_30 = arith.constant 0 : index
      %c0_31 = arith.constant 0 : index
      %c0_32 = arith.constant 0 : index
      %47 = vector.load %arg13[%c0_30, %c0_31, %c0_32] : memref<4x8x16xf32, #tpu.memory_space<vmem>>, vector<4x8x16xf32>
      %48 = vector.broadcast %35 : vector<4x8x1xf32> to vector<4x8x16xf32>
      %49 = arith.mulf %48, %47 : vector<4x8x16xf32>
      %50 = arith.addf %49, %46 : vector<4x8x16xf32>
      %c0_33 = arith.constant 0 : index
      %c0_34 = arith.constant 0 : index
      %c0_35 = arith.constant 0 : index
      %51 = vector.load %arg13[%c0_33, %c0_34, %c0_35] : memref<4x8x16xf32, #tpu.memory_space<vmem>>, vector<4x8x16xf32>
      tpu.vector_store %arg13[%c0_33, %c0_34, %c0_35], %50 {strides = array<i32>} : memref<4x8x16xf32, #tpu.memory_space<vmem>>, vector<4x8x16xf32>,
      %c0_36 = arith.constant 0 : index
      %c0_37 = arith.constant 0 : index
      %c0_38 = arith.constant 0 : index
      %52 = vector.load %arg11[%c0_36, %c0_37, %c0_38] : memref<4x8x1xf32, #tpu.memory_space<vmem>>, vector<4x8x1xf32>
      tpu.vector_store %arg11[%c0_36, %c0_37, %c0_38], %33 {strides = array<i32>} : memref<4x8x1xf32, #tpu.memory_space<vmem>>, vector<4x8x1xf32>,
    } else {
    }
    %c0_i32_3 = arith.constant 0 : i32
    %9 = arith.cmpi eq, %arg2, %c0_i32_3 : i32
    %10 = arith.extui %9 : i1 to i32
    %c0_i32_4 = arith.constant 0 : i32
    %11 = arith.cmpi ne, %10, %c0_i32_4 : i32
    scf.if %11 {
      %c0 = arith.constant 0 : index
      %c0_5 = arith.constant 0 : index
      %c0_6 = arith.constant 0 : index
      %12 = vector.load %arg13[%c0, %c0_5, %c0_6] : memref<4x8x16xf32, #tpu.memory_space<vmem>>, vector<4x8x16xf32>
      %c0_7 = arith.constant 0 : index
      %c0_8 = arith.constant 0 : index
      %c0_9 = arith.constant 0 : index
      %13 = vector.load %arg12[%c0_7, %c0_8, %c0_9] : memref<4x8x1xf32, #tpu.memory_space<vmem>>, vector<4x8x1xf32>
      %14 = tpu.reciprocal %13 {approx = true} : vector<4x8x1xf32> -> vector<4x8x1xf32>
      %15 = vector.broadcast %14 : vector<4x8x1xf32> to vector<4x8x16xf32>
      %16 = arith.mulf %12, %15 : vector<4x8x16xf32>
      %17 = vector.extract_strided_slice %16 {offsets = [0, 0, 0], sizes = [1, 8, 16], strides = [1, 1, 1]} : vector<4x8x16xf32> to vector<1x8x16xf32>
      %18 = vector.shape_cast %17 : vector<1x8x16xf32> to vector<8x16xf32>
      %c0_10 = arith.constant 0 : index
      %c0_11 = arith.constant 0 : index
      %19 = vector.load %arg14[%c0_10, %c0_11] : memref<8x64xf32, #tpu.memory_space<vmem>>, vector<8x16xf32>
      tpu.vector_store %arg14[%c0_10, %c0_11], %18 {strides = array<i32>} : memref<8x64xf32, #tpu.memory_space<vmem>>, vector<8x16xf32>,
      %20 = vector.extract_strided_slice %16 {offsets = [1, 0, 0], sizes = [1, 8, 16], strides = [1, 1, 1]} : vector<4x8x16xf32> to vector<1x8x16xf32>
      %21 = vector.shape_cast %20 : vector<1x8x16xf32> to vector<8x16xf32>
      %c0_12 = arith.constant 0 : index
      %c16 = arith.constant 16 : index
      %22 = vector.load %arg14[%c0_12, %c16] : memref<8x64xf32, #tpu.memory_space<vmem>>, vector<8x16xf32>
      tpu.vector_store %arg14[%c0_12, %c16], %21 {strides = array<i32>} : memref<8x64xf32, #tpu.memory_space<vmem>>, vector<8x16xf32>,
      %23 = vector.extract_strided_slice %16 {offsets = [2, 0, 0], sizes = [1, 8, 16], strides = [1, 1, 1]} : vector<4x8x16xf32> to vector<1x8x16xf32>
      %24 = vector.shape_cast %23 : vector<1x8x16xf32> to vector<8x16xf32>
      %c0_13 = arith.constant 0 : index
      %c32 = arith.constant 32 : index
      %25 = vector.load %arg14[%c0_13, %c32] : memref<8x64xf32, #tpu.memory_space<vmem>>, vector<8x16xf32>
      tpu.vector_store %arg14[%c0_13, %c32], %24 {strides = array<i32>} : memref<8x64xf32, #tpu.memory_space<vmem>>, vector<8x16xf32>,
      %26 = vector.extract_strided_slice %16 {offsets = [3, 0, 0], sizes = [1, 8, 16], strides = [1, 1, 1]} : vector<4x8x16xf32> to vector<1x8x16xf32>
      %27 = vector.shape_cast %26 : vector<1x8x16xf32> to vector<8x16xf32>
      %c0_14 = arith.constant 0 : index
      %c48 = arith.constant 48 : index
      %28 = vector.load %arg14[%c0_14, %c48] : memref<8x64xf32, #tpu.memory_space<vmem>>, vector<8x16xf32>
      tpu.vector_store %arg14[%c0_14, %c48], %27 {strides = array<i32>} : memref<8x64xf32, #tpu.memory_space<vmem>>, vector<8x16xf32>,
      %c0_15 = arith.constant 0 : index
      %c0_16 = arith.constant 0 : index
      %29 = vector.load %arg14[%c0_15, %c0_16] : memref<8x64xf32, #tpu.memory_space<vmem>>, vector<8x64xf32>
      %30 = arith.truncf %29 : vector<8x64xf32> to vector<8x64xbf16>
      %c0_17 = arith.constant 0 : index
      %c0_18 = arith.constant 0 : index
      %31 = vector.load %arg7[%c0_17, %c0_18] : memref<64x32xbf16, #tpu.memory_space<vmem>>, vector<64x32xbf16>
      %cst = arith.constant dense<0.000000e+00> : vector<8x32xf32>
      %32 = tpu.matmul %30, %31, %cst {dimension_numbers = #tpu.dot_dimension_numbers<[1], [0], [0], [1], [0, 0, 1, 1], [], []>} : vector<8x64xbf16>, vector<64x32xbf16>, vector<8x32xf32> -> vector<8x32xf32>
      %c0_19 = arith.constant 0 : index
      %c0_20 = arith.constant 0 : index
      %c0_21 = arith.constant 0 : index
      %33 = vector.load %arg3[%c0_19, %c0_20, %c0_21] : memref<1x8x32xf32, #tpu.memory_space<vmem>>, vector<1x8x32xf32>
      %34 = vector.shape_cast %33 : vector<1x8x32xf32> to vector<8x32xf32>
      %c0_22 = arith.constant 0 : index
      %c0_23 = arith.constant 0 : index
      %35 = vector.load %arg8[%c0_22, %c0_23] : memref<1x32xf32, #tpu.memory_space<vmem>>, vector<1x32xf32>
      %c0_24 = arith.constant 0 : index
      %c0_25 = arith.constant 0 : index
      %36 = vector.load %arg9[%c0_24, %c0_25] : memref<1x32xf32, #tpu.memory_space<vmem>>, vector<1x32xf32>
      %37 = arith.addf %34, %32 : vector<8x32xf32>
      %cst_26 = arith.constant dense<0.000000e+00> : vector<8xf32>
      %38 = vector.multi_reduction <add>, %37, %cst_26 [1] : vector<8x32xf32> to vector<8xf32>
      %39 = vector.shape_cast %38 : vector<8xf32> to vector<8x1xf32>
      %cst_27 = arith.constant 3.200000e+01 : f32
      %40 = vector.broadcast %cst_27 : f32 to vector<8x1xf32>
      %41 = arith.divf %39, %40 : vector<8x1xf32>
      %42 = vector.broadcast %41 : vector<8x1xf32> to vector<8x32xf32>
      %43 = arith.subf %37, %42 : vector<8x32xf32>
      %44 = arith.mulf %43, %43 : vector<8x32xf32>
      %cst_28 = arith.constant dense<0.000000e+00> : vector<8xf32>
      %45 = vector.multi_reduction <add>, %44, %cst_28 [1] : vector<8x32xf32> to vector<8xf32>
      %46 = vector.shape_cast %45 : vector<8xf32> to vector<8x1xf32>
      %cst_29 = arith.constant 3.200000e+01 : f32
      %47 = vector.broadcast %cst_29 : f32 to vector<8x1xf32>
      %48 = arith.divf %46, %47 : vector<8x1xf32>
      %cst_30 = arith.constant 9.99999974E-6 : f32
      %49 = vector.broadcast %cst_30 : f32 to vector<8x1xf32>
      %50 = arith.addf %48, %49 : vector<8x1xf32>
      %51 = math.rsqrt %50 : vector<8x1xf32>
      %52 = vector.broadcast %51 : vector<8x1xf32> to vector<8x32xf32>
      %53 = arith.mulf %43, %52 : vector<8x32xf32>
      %54 = vector.broadcast %35 : vector<1x32xf32> to vector<8x32xf32>
      %55 = arith.mulf %53, %54 : vector<8x32xf32>
      %56 = vector.broadcast %36 : vector<1x32xf32> to vector<8x32xf32>
      %57 = arith.addf %55, %56 : vector<8x32xf32>
      %c0_31 = arith.constant 0 : index
      %c0_32 = arith.constant 0 : index
      %c0_33 = arith.constant 0 : index
      %58 = vector.load %arg10[%c0_31, %c0_32, %c0_33] : memref<1x8x32xf32, #tpu.memory_space<vmem>>, vector<1x8x32xf32>
      %59 = vector.shape_cast %58 : vector<1x8x32xf32> to vector<8x32xf32>
      %60 = vector.shape_cast %57 : vector<8x32xf32> to vector<1x8x32xf32>
      tpu.vector_store %arg10[%c0_31, %c0_32, %c0_33], %60 {strides = array<i32>} : memref<1x8x32xf32, #tpu.memory_space<vmem>>, vector<1x8x32xf32>,
    } else {
    }
    return
  }
  func.func @transform_0(%arg0: i32, %arg1: i32, %arg2: i32) -> (i32, i32, i32) {
    %c0_i32 = arith.constant 0 : i32
    %c0_i32_0 = arith.constant 0 : i32
    return %arg0, %arg1, %c0_i32 : i32, i32, i32
  }
  func.func @transform_1(%arg0: i32, %arg1: i32, %arg2: i32) -> (i32, i32, i32, i32) {
    %c0_i32 = arith.constant 0 : i32
    %c0_i32_0 = arith.constant 0 : i32
    %c0_i32_1 = arith.constant 0 : i32
    return %arg0, %c0_i32, %arg1, %c0_i32_0 : i32, i32, i32, i32
  }
  func.func @transform_2(%arg0: i32, %arg1: i32, %arg2: i32) -> (i32, i32, i32, i32) {
    %c0_i32 = arith.constant 0 : i32
    %c0_i32_0 = arith.constant 0 : i32
    %c0_i32_1 = arith.constant 0 : i32
    return %arg0, %c0_i32, %arg2, %c0_i32_0 : i32, i32, i32, i32
  }
  func.func @transform_3(%arg0: i32, %arg1: i32, %arg2: i32) -> (i32, i32, i32, i32) {
    %c0_i32 = arith.constant 0 : i32
    %c0_i32_0 = arith.constant 0 : i32
    %c0_i32_1 = arith.constant 0 : i32
    return %arg0, %c0_i32, %arg2, %c0_i32_0 : i32, i32, i32, i32
  }
  func.func @transform_4(%arg0: i32, %arg1: i32, %arg2: i32) -> (i32, i32) {
    %c0_i32 = arith.constant 0 : i32
    %c0_i32_0 = arith.constant 0 : i32
    %c0_i32_1 = arith.constant 0 : i32
    return %c0_i32, %c0_i32_0 : i32, i32
  }
  func.func @transform_5(%arg0: i32, %arg1: i32, %arg2: i32) -> (i32, i32) {
    %c0_i32 = arith.constant 0 : i32
    %c0_i32_0 = arith.constant 0 : i32
    %c0_i32_1 = arith.constant 0 : i32
    return %c0_i32, %c0_i32_0 : i32, i32
  }
  func.func @transform_6(%arg0: i32, %arg1: i32, %arg2: i32) -> (i32, i32) {
    %c0_i32 = arith.constant 0 : i32
    %c0_i32_0 = arith.constant 0 : i32
    %c0_i32_1 = arith.constant 0 : i32
    return %c0_i32, %c0_i32_0 : i32, i32
  }
  func.func @transform_7(%arg0: i32, %arg1: i32, %arg2: i32) -> (i32, i32, i32) {
    %c0_i32 = arith.constant 0 : i32
    %c0_i32_0 = arith.constant 0 : i32
    return %arg0, %arg1, %c0_i32 : i32, i32, i32
  }
}

module attributes {stable_mosaic.version = 11 : i64} {
  func.func @_logits_kernel(%arg0: i32, %arg1: i32, %arg2: memref<16x32xf32, #tpu.memory_space<vmem>>, %arg3: memref<64x32xbf16, #tpu.memory_space<vmem>>, %arg4: memref<1x64xf32, #tpu.memory_space<vmem>>, %arg5: memref<16x64xf32, #tpu.memory_space<vmem>>) attributes {dimension_semantics = [#tpu.dimension_semantics<parallel>, #tpu.dimension_semantics<parallel>], iteration_bounds = array<i64: 1, 1>, scalar_prefetch = 0 : i64, scratch_operands = 0 : i64, tpu.core_type = #tpu.core_type<tc>, window_params = [{transform_indices = @transform_0, window_bounds = array<i64: 16, 32>}, {transform_indices = @transform_1, window_bounds = array<i64: 64, 32>}, {transform_indices = @transform_2, window_bounds = array<i64: 1, 64>}, {transform_indices = @transform_3, window_bounds = array<i64: 16, 64>}]} {
    %c0 = arith.constant 0 : index
    %c0_0 = arith.constant 0 : index
    %0 = vector.load %arg2[%c0, %c0_0] : memref<16x32xf32, #tpu.memory_space<vmem>>, vector<16x32xf32>
    %1 = arith.truncf %0 : vector<16x32xf32> to vector<16x32xbf16>
    %c0_1 = arith.constant 0 : index
    %c0_2 = arith.constant 0 : index
    %2 = vector.load %arg3[%c0_1, %c0_2] : memref<64x32xbf16, #tpu.memory_space<vmem>>, vector<64x32xbf16>
    %cst = arith.constant dense<0.000000e+00> : vector<16x64xf32>
    %3 = tpu.matmul %1, %2, %cst {dimension_numbers = #tpu.dot_dimension_numbers<[1], [1], [0], [0], [0, 0, 1, 0], [], []>} : vector<16x32xbf16>, vector<64x32xbf16>, vector<16x64xf32> -> vector<16x64xf32>
    %c0_3 = arith.constant 0 : index
    %c0_4 = arith.constant 0 : index
    %4 = vector.load %arg4[%c0_3, %c0_4] : memref<1x64xf32, #tpu.memory_space<vmem>>, vector<1x64xf32>
    %5 = vector.broadcast %4 : vector<1x64xf32> to vector<16x64xf32>
    %6 = arith.addf %3, %5 : vector<16x64xf32>
    %c0_5 = arith.constant 0 : index
    %c0_6 = arith.constant 0 : index
    %7 = vector.load %arg5[%c0_5, %c0_6] : memref<16x64xf32, #tpu.memory_space<vmem>>, vector<16x64xf32>
    tpu.vector_store %arg5[%c0_5, %c0_6], %6 {strides = array<i32>} : memref<16x64xf32, #tpu.memory_space<vmem>>, vector<16x64xf32>,
    return
  }
  func.func @transform_0(%arg0: i32, %arg1: i32) -> (i32, i32) {
    %c0_i32 = arith.constant 0 : i32
    %c0_i32_0 = arith.constant 0 : i32
    return %arg0, %c0_i32 : i32, i32
  }
  func.func @transform_1(%arg0: i32, %arg1: i32) -> (i32, i32) {
    %c0_i32 = arith.constant 0 : i32
    %c0_i32_0 = arith.constant 0 : i32
    return %arg1, %c0_i32 : i32, i32
  }
  func.func @transform_2(%arg0: i32, %arg1: i32) -> (i32, i32) {
    %c0_i32 = arith.constant 0 : i32
    %c0_i32_0 = arith.constant 0 : i32
    return %c0_i32, %arg1 : i32, i32
  }
  func.func @transform_3(%arg0: i32, %arg1: i32) -> (i32, i32) {
    %c0_i32 = arith.constant 0 : i32
    return %arg0, %arg1 : i32, i32
  }
}

</mosaic_0001>

<bundles_post_ra>
// kernel: decoder_only_transformer.13
= control target key start
LH: loop header
LB: loop body
LE: loop exit
PB: predicated region body
PF: predicated region fallthrough
CT: control target
= control target key end

     0   :  { %v186_v1 = vmov 0.0   ;;  %vm54_vm0 = vcmask 261120   ;;  %vm187_vm1 = vmmov 0   ;;  %s249_s0 = inlined_call_operand.vmem [shape: f32[16,32], index: 0, kind: input, shape index: {}]   ;;  %s250_s1 = inlined_call_operand.vmem [shape: bf16[64,32], index: 1, kind: input, shape index: {}]   ;;  %s251_s2 = inlined_call_operand.vmem [shape: f32[1,64], index: 2, kind: input, shape index: {}]   ;;  %s252_s3 = inlined_call_operand.hbm [shape: f32[16,64], index: 3, kind: output, shape index: {}]  }
   0x1   :  { %v158_v0 = vld [vmem:[%s250_s1] sm:$0xff]   ;;  %141 = vmatprep.subr.bf16.mxu0 %v186_v1  ;;  %v159_v3 = vld [vmem:[%s250_s1 + $0x8] sm:$0xff]   ;;  %149 = vmatprep.mubr.msk.bf16.mxu0 %vm187_vm1, %v186_v1 }
   0x2   :  { %v59_v2 = vsel %vm54_vm0, %v158_v0, 0 }
   0x3   :  { %142 = vmatpush3.bf16.xpose.msra.mxu0 %v59_v2 }
   0x4   :  { %143 = vmatprep.subr.bf16.mxu0 %v186_v1 }
   0x5   :  { %8 = vsyncpa [#allocation3], 0  ;;  %v62_v4 = vsel %vm54_vm0, %v159_v3, 0  ;;  %v160_v5 = vld [vmem:[%s250_s1 + $0x10] sm:$0xff]   ;;  %v161_v7 = vld [vmem:[%s250_s1 + $0x18] sm:$0xff]   ;;  %s188_s26 = smov [#allocation2]  }
   0x6   :  { %v65_v6 = vsel %vm54_vm0, %v160_v5, 0  ;;  %v68_v8 = vsel %vm54_vm0, %v161_v7, 0  ;;  %v16_v9 = vld [vmem:[%s249_s0] sm:$0xff]  ;;  %v17_v10 = vld [vmem:[%s249_s0 + $0x8] sm:$0xff]  ;;  %s119_s1 = sshll.u32 %s188_s26, 4  ;;  %vm111_vm2 = vcmask 523264   ;;  %s120_s1 = int_to_ptr.vmem [resolvable:$true] %s119_s1 }
   0x7   :  { %v18_v11 = vpack.c.bf16 %v17_v10, %v16_v9  ;;  %v130_v12 = vld [vmem:[%s251_s2] ss:$0 sm:$0xff]  ;;  %s162_s0 = scalar_lea.vmem %s120_s1, 256  ;;  %p167_p1 = scmp.lt.s32.totalorder %s120_s1, %s120_s1 }
   0x8   :  { %p163_p0 = scmp.ne.s32.totalorder %s120_s1, %s162_s0  ;;  %p168_p2 = scmp.lt.s32.totalorder %s162_s0, %s162_s0 }
   0xa   :  { %p169_p3 = por %p168_p2, %p167_p1 }
   0xb   :  { %144 = vmatpush3.bf16.xpose.msra.mxu0 %v62_v4 }
   0xc   :  { %145 = vmatprep.subr.bf16.mxu0 %v186_v1  ;;  %p170_p4 = pnand %p169_p3, %p163_p0 }
  0x13   :  { %146 = vmatpush3.bf16.xpose.msra.mxu0 %v65_v6 }
  0x14   :  { %147 = vmatprep.subr.bf16.mxu0 %v186_v1 }
  0x1b   :  { %148 = vmatpush3.bf16.xpose.msra.mxu0 %v68_v8 }
  0x22   :  { %150 = vmatmul.mubr.msk.bf16.vlgmr.msra.gmra.mrb[0].mxu0 %vm54_vm0, %v18_v11 }
  0xf5   :  { %v104_v13 = vpop.f32.mrb[0].mxu0 }
  0xf6   :  { %v105_v14 = vadd.f32 %v130_v12, %v104_v13  ;;  %v151_v15 = vpop.f32.mrb[1].mxu0 }
  0xf7   :  { %v107_v16 = vpop.f32.mrb[2].mxu0 }
  0xf8   :  { %112 = vst.msk [vmem:[#allocation2] sm:$0xff] %vm111_vm2, %v105_v14  ;;  %v108_v17 = vadd.f32 %v130_v12, %v107_v16  ;;  %v152_v18 = vpop.f32.mrb[3].mxu0 }
  0xfa   :  { %113 = vst.msk [vmem:[#allocation2 + $0x8] sm:$0xff] %vm111_vm2, %v108_v17 }
  0xfb   :  { %173 = shalt.err (!%p170_p4)
}
  0xfc   :  { %s174_s28 = scalar_lea.hbm %s252_s3, 256 }
  0xfd   :  { %p175_p5 = scmp.ne.s32.totalorder %s252_s3, %s174_s28  ;;  %p178_p6 = scmp.lt.u32.totalorder %s174_s28, %s252_s3 }
  0xff   :  { %p180_p7 = pnand %p178_p6, %p175_p5 }
 0x101   :  { %183 = shalt.err (!%p180_p7)
}
 0x102   :  { %s189_s6 = smov 128   ;;  %s190_s7 = smov 8  }
 0x103   :  { %125 = dma.vmem_to_hbm [thread:$0]  %s120_s1, 256, %s252_s3, [#allocation3], %s189_s6, %s189_s6, %s190_s7  }
 0x104   :  { %184 = dma.done.wait [#allocation3], 256  }
 0x105   :  { %185 = vsyncadd [#allocation3], 4294967040 }
 0x106   :  { %129 = vsyncpa [#allocation3], 1 }

// kernel: decoder_only_transformer.7
= control target key start
LH: loop header
LB: loop body
LE: loop exit
PB: predicated region body
PF: predicated region fallthrough
CT: control target
= control target key end

     0   :  { %s904_s21 = smov 0   ;;  %s906_s22 = smov 0   ;;  %s988_s0 = inlined_call_operand.vmem [shape: f32[2,8,32], index: 0, kind: input, shape index: {}]   ;;  %s989_s1 = inlined_call_operand.vmem [shape: bf16[32,64], index: 1, kind: input, shape index: {}]   ;;  %s990_s2 = inlined_call_operand.vmem [shape: bf16[32,64], index: 2, kind: input, shape index: {}]   ;;  %s991_s3 = inlined_call_operand.vmem [shape: bf16[32,64], index: 3, kind: input, shape index: {}]   ;;  %s992_s4 = inlined_call_operand.vmem [shape: bf16[2,4,8,16], index: 4, kind: output, shape index: {0}]   ;;  %s993_s5 = inlined_call_operand.vmem [shape: bf16[2,4,8,16], index: 5, kind: output, shape index: {1}]   ;;  %s994_s6 = inlined_call_operand.vmem [shape: bf16[2,4,8,16], index: 6, kind: output, shape index: {2}]  }
   0x1   :  { %s908_s23 = smov 0  }
   0x2 LB: > { %s29_s24 = sadd.s32 1, %s858_s22  ;;  %p735_p0 = scmp.ge.s32.totalorder %s862_s23, 1  ;;  %s862_s23 = sphi %s908_s23, %s17_s23   ;;  %s858_s22 = sphi %s906_s22, %s996_s22   ;;  %s854_s21 = sphi %s904_s21, %s995_s21  }
   0x3   : > { %p31_p1 = scmp.ge.s32.totalorder %s29_s24, 2  ;;  %p239_p2 = scmp.lt.s32.totalorder %s862_s23, 3 }
   0x5   : > { %s998_s24 = smov (%p31_p1, %s29_s24), 0  ;;  %p240_p3 = pnand %p735_p0, %p239_p2 }
   0x6   : > { %v834_v0 = vld [vmem:[%s989_s1] sm:$0xff] (!%p240_p3)   ;;  %v864_v1 = vmov (!%p240_p3), 0.0   ;;  %v836_v3 = vld [vmem:[%s989_s1 + $0x8] sm:$0xff] (!%p240_p3)   ;;  %vm865_vm0 = vmmov (!%p240_p3), 0   ;;  %p290_p4 = scmp.lt.s32.totalorder (!%p240_p3), %s854_s21, 1  ;;  %vm340_vm1 = vcmask (!%p240_p3), 261120  }
   0x7   : > { %243 = sbr.rel (%p240_p3) target bundleno = 366 (0x16e), region = 36  ;;  %781 = vmatprep.subr.bf16.mxu0 (!%p240_p3), %v864_v1  ;;  %789 = vmatprep.subr.bf16.mxu1 (!%p240_p3), %v864_v1  ;;  %v835_v2 = vld [vmem:[%s990_s2] sm:$0xff] (!%p240_p3)   ;;  %v837_v4 = vld [vmem:[%s990_s2 + $0x8] sm:$0xff] (!%p240_p3)   ;;  %vm497_vm2 = vcmask (!%p240_p3), 125952   ;;  %s867_s28 = smov (!%p240_p3), 96  }
   0x8   : > { %782 = vmatpush3.bf16.msra.mxu0 (!%p240_p3), %v834_v0  ;;  %785 = vmatprep.mubr.msk.bf16.mxu0 (!%p240_p3), %vm865_vm0, %v864_v1  ;;  %v838_v6 = vld [vmem:[%s991_s3] sm:$0xff] (!%p240_p3)   ;;  %v839_v8 = vld [vmem:[%s991_s3 + $0x8] sm:$0xff] (!%p240_p3)   ;;  %s868_s8 = smov (!%p240_p3), 80  }
   0x9   : > { %790 = vmatpush3.bf16.msra.mxu1 (!%p240_p3), %v835_v2  ;;  %783 = vmatprep.subr.bf16.mxu0 (!%p240_p3), %v864_v1 }
   0xa   : > { %791 = vmatprep.subr.bf16.mxu1 (!%p240_p3), %v864_v1  ;;  %793 = vmatprep.mubr.msk.bf16.mxu1 (!%p240_p3), %vm865_vm0, %v864_v1 }
   0xc   : > { %784 = vmatpush3.bf16.msra.mxu0 (!%p240_p3), %v836_v3 }
   0xd   : > { %792 = vmatpush3.bf16.msra.mxu1 (!%p240_p3), %v837_v4  ;;  %797 = vmatprep.subr.bf16.mxu0 (!%p240_p3), %v864_v1 }
   0xe   : > { %s1000_s21 = smov (!%p290_p4, %s854_s21), 1 }
   0xf   : > { %s736_s9 = sshll.u32 %s1000_s21, 3  ;;  %s766_s17 = sshll.u32 %s1000_s21, 4 }
  0x10   : > { %s296_s12 = scalar_lea.vmem %s988_s0, %s736_s9  ;;  %s949_s20 = scalar_lea.vmem %s992_s4, %s766_s17 }
  0x11   : > { %v322_v5 = vld [vmem:[%s296_s12] sm:$0xff]  ;;  %s954_s27 = scalar_lea.vmem %s993_s5, %s766_s17  ;;  %s866_s21 = smov 112  }
  0x12   : > { %v323_v7 = vpack.c.bf16 %v322_v5, %v322_v5  ;;  %s320_s7 = scalar_lea.vmem %s994_s6, %s766_s17 }
  0x14   : > { %786 = vmatmul.mubr.msk.bf16.vlgmr.msra.gmra.mrb[0].mxu0 %vm340_vm1, %v323_v7  ;;  %794 = vmatmul.mubr.msk.bf16.vlgmr.msra.gmra.mrb[0].mxu1 %vm340_vm1, %v323_v7 }
  0x15   : > { %798 = vmatpush3.bf16.msra.mxu0 %v838_v6  ;;  %801 = vmatprep.mubr.msk.bf16.mxu0 %vm865_vm0, %v864_v1 }
  0x16   : > { %799 = vmatprep.subr.bf16.mxu0 %v864_v1 }
  0x19   : > { %800 = vmatpush3.bf16.msra.mxu0 %v839_v8 }
  0x1c   : > { %802 = vmatmul.mubr.msk.bf16.vlgmr.msra.gmra.mrb[4].mxu0 %vm340_vm1, %v323_v7 }
  0xe7   : > { %v378_v9 = vpop.f32.mrb[0].mxu0  ;;  %v434_v10 = vpop.f32.mrb[0].mxu1 }
  0xe8   : > { %v496_v11 = vpack.c.bf16 %v378_v9, %v378_v9  ;;  %v787_v12 = vpop.f32.mrb[1].mxu0  ;;  %v499_v13 = vpack.c.bf16 %v434_v10, %v434_v10  ;;  %v795_v14 = vpop.f32.mrb[1].mxu1 }
  0xe9   : > { %v381_v15 = vpop.f32.mrb[2].mxu0  ;;  %v437_v16 = vpop.f32.mrb[2].mxu1 }
  0xea   : > { %506 = vrot.lane.b32.xlu0 %v496_v11, %s866_s21  ;;  %v788_v17 = vpop.f32.mrb[3].mxu0  ;;  %527 = vrot.lane.b32.xlu1 %v496_v11, %s867_s28  ;;  %v796_v18 = vpop.f32.mrb[3].mxu1  ;;  %498 = vst.msk [vmem:[%s949_s20] sm:$0xf] %vm497_vm2, %v496_v11  ;;  %500 = vst.msk [vmem:[%s954_s27] sm:$0xf] %vm497_vm2, %v499_v13 }
  0xee   : > { %514 = vrot.lane.b32.xlu0 %v499_v13, %s866_s21 }
  0xef   : > { %v490_v19 = vpop.f32.mrb[4].mxu0 }
  0xf0   : > { %v501_v20 = vpack.c.bf16 %v490_v19, %v490_v19  ;;  %v803_v21 = vpop.f32.mrb[5].mxu0 }
  0xf1   : > { %v493_v22 = vpop.f32.mrb[6].mxu0 }
  0xf2   : > { %532 = vrot.lane.b32.xlu0 %v499_v13, %s867_s28  ;;  %522 = vrot.lane.b32.xlu1 %v501_v20, %s866_s21  ;;  %v804_v23 = vpop.f32.mrb[7].mxu0  ;;  %502 = vst.msk [vmem:[%s320_s7] sm:$0xf] %vm497_vm2, %v501_v20 }
  0xf6   : > { %542 = vrot.lane.b32.xlu0 %v496_v11, %s868_s8  ;;  %537 = vrot.lane.b32.xlu1 %v501_v20, %s867_s28 }
  0xfa   : > { %552 = vrot.lane.b32.xlu0 %v501_v20, %s868_s8  ;;  %547 = vrot.lane.b32.xlu1 %v499_v13, %s868_s8 }
 0x15c   : > { %v507_v24 = vpop.permute.xlu0 %506  ;;  %v528_v25 = vpop.permute.xlu1 %527 }
 0x15d   : > { %753 = vst.msk [vmem:[%s949_s20 + $0x4] sm:$0xf] %vm497_vm2, %v507_v24  ;;  %758 = vst.msk [vmem:[%s949_s20 + $0x8] sm:$0xf] %vm497_vm2, %v528_v25 }
 0x160   : > { %v515_v26 = vpop.permute.xlu0 %514 }
 0x161   : > { %755 = vst.msk [vmem:[%s954_s27 + $0x4] sm:$0xf] %vm497_vm2, %v515_v26 }
 0x164   : > { %v533_v27 = vpop.permute.xlu0 %532  ;;  %v523_v28 = vpop.permute.xlu1 %522 }
 0x165   : > { %759 = vst.msk [vmem:[%s954_s27 + $0x8] sm:$0xf] %vm497_vm2, %v533_v27  ;;  %757 = vst.msk [vmem:[%s320_s7 + $0x4] sm:$0xf] %vm497_vm2, %v523_v28 }
 0x168   : > { %v543_v29 = vpop.permute.xlu0 %542  ;;  %v538_v30 = vpop.permute.xlu1 %537 }
 0x169   : > { %761 = vst.msk [vmem:[%s949_s20 + $0xc] sm:$0xf] %vm497_vm2, %v543_v29  ;;  %760 = vst.msk [vmem:[%s320_s7 + $0x8] sm:$0xf] %vm497_vm2, %v538_v30 }
 0x16c   : > { %v553_v31 = vpop.permute.xlu0 %552  ;;  %v548_v32 = vpop.permute.xlu1 %547 }
 0x16d   : > { %763 = vst.msk [vmem:[%s320_s7 + $0xc] sm:$0xf] %vm497_vm2, %v553_v31  ;;  %762 = vst.msk [vmem:[%s954_s27 + $0xc] sm:$0xf] %vm497_vm2, %v548_v32 }
 0x16e PF: > { %s17_s23 = sadd.s32 1, %s862_s23   ;;  %s995_s21 = smov %s858_s22 }
 0x16f   : > { %p14_p5 = scmp.ge.s32.totalorder %s17_s23, 4   ;;  %s996_s22 = smov %s998_s24 }
 0x171   :  { %16 = sbr.rel (!%p14_p5) target bundleno = 2 (0x2), region = 99 }

// kernel: decoder_only_transformer.9
= control target key start
LH: loop header
LB: loop body
LE: loop exit
PB: predicated region body
PF: predicated region fallthrough
CT: control target
= control target key end

     0   :  { %vm31_vm0 = vcmask 261120   ;;  %v359_v0 = vmov 0.0   ;;  %vm360_vm1 = vmmov 0   ;;  %s466_s1 = inlined_call_operand.vmem [shape: bf16[32,128], index: 1, kind: input, shape index: {}]   ;;  %s467_s0 = inlined_call_operand.vmem [shape: f32[16,32], index: 0, kind: input, shape index: {}]   ;;  %s468_s3 = inlined_call_operand.vmem [shape: bf16[128,32], index: 3, kind: input, shape index: {}]   ;;  %s469_s2 = inlined_call_operand.vmem [shape: f32[1,128], index: 2, kind: input, shape index: {}]   ;;  %s470_s4 = inlined_call_operand.vmem [shape: f32[1,32], index: 4, kind: input, shape index: {}]   ;;  %s471_s5 = inlined_call_operand.vmem [shape: f32[1,32], index: 5, kind: input, shape index: {}]   ;;  %s472_s6 = inlined_call_operand.vmem [shape: f32[1,32], index: 6, kind: input, shape index: {}]   ;;  %s473_s7 = inlined_call_operand.vmem [shape: f32[16,32], index: 7, kind: output, shape index: {}]  }
   0x1   :  { %315 = vmatprep.subr.bf16.mxu0 %v359_v0  ;;  %v345_v1 = vld [vmem:[%s466_s1] sm:$0xff]   ;;  %319 = vmatprep.mubr.msk.bf16.mxu0 %vm360_vm1, %v359_v0  ;;  %32 = vst.msk [vmem:[#allocation2] sm:$0xff] %vm31_vm0, %v359_v0  ;;  %33 = vst.msk [vmem:[#allocation2 + $0x8] sm:$0xff] %vm31_vm0, %v359_v0  ;;  %v346_v2 = vld [vmem:[%s466_s1 + $0x8] sm:$0xff]  }
   0x2   :  { %323 = vmatprep.subr.bf16.mxu1 %v359_v0  ;;  %339 = vmatprep.mubr.msk.bf16.mxu1 %vm360_vm1, %v359_v0  ;;  %v34_v3 = vld [vmem:[%s467_s0] sm:$0xff]  ;;  %v35_v4 = vld [vmem:[%s467_s0 + $0x8] sm:$0xff]  ;;  %v349_v8 = vld [vmem:[%s468_s3 + $0x10] sm:$0xff]  }
   0x3   :  { %316 = vmatpush3.bf16.msra.mxu0 %v345_v1  ;;  %v347_v5 = vld [vmem:[%s468_s3] sm:$0xff]   ;;  %v36_v6 = vpack.c.bf16 %v35_v4, %v34_v3  ;;  %v348_v7 = vld [vmem:[%s468_s3 + $0x8] sm:$0xff]   ;;  %v350_v9 = vld [vmem:[%s468_s3 + $0x18] sm:$0xff]  }
   0x4   :  { %317 = vmatprep.subr.bf16.mxu0 %v359_v0  ;;  %324 = vmatpush3.bf16.msra.mxu1 %v347_v5  ;;  %v351_v10 = vld [vmem:[%s468_s3 + $0x20] sm:$0xff]   ;;  %v352_v11 = vld [vmem:[%s468_s3 + $0x28] sm:$0xff]   ;;  %v353_v12 = vld [vmem:[%s468_s3 + $0x30] sm:$0xff]  }
   0x5   :  { %325 = vmatprep.subr.bf16.mxu1 %v359_v0  ;;  %v354_v13 = vld [vmem:[%s468_s3 + $0x38] sm:$0xff]   ;;  %v288_v14 = vld [vmem:[%s469_s2] ss:$0 sm:$0xff] }
   0x6   :  { %v300_v32 = vld [vmem:[%s470_s4] ss:$0 sm:$0xff] }
   0x7   :  { %318 = vmatpush3.bf16.msra.mxu0 %v346_v2  ;;  %v301_v58 = vld [vmem:[%s471_s5] ss:$0 sm:$0xff] }
   0x8   :  { %326 = vmatpush3.bf16.msra.mxu1 %v348_v7  ;;  %v107_v24 = vld [vmem:[#allocation2] sm:$0xff]  ;;  %v108_v26 = vld [vmem:[#allocation2 + $0x8] sm:$0xff] }
   0x9   :  { %327 = vmatprep.subr.bf16.mxu1 %v359_v0  ;;  %v302_v60 = vld [vmem:[%s472_s6] ss:$0 sm:$0xff] }
   0xa   :  { %320 = vmatmul.mubr.msk.bf16.vlgmr.msra.gmra.mrb[0].mxu0 %vm31_vm0, %v36_v6 }
   0xc   :  { %328 = vmatpush3.bf16.msra.mxu1 %v349_v8 }
   0xd   :  { %329 = vmatprep.subr.bf16.mxu1 %v359_v0 }
  0x10   :  { %330 = vmatpush3.bf16.msra.mxu1 %v350_v9 }
  0x11   :  { %331 = vmatprep.subr.bf16.mxu1 %v359_v0 }
  0x14   :  { %332 = vmatpush3.bf16.msra.mxu1 %v351_v10 }
  0x15   :  { %333 = vmatprep.subr.bf16.mxu1 %v359_v0 }
  0x18   :  { %334 = vmatpush3.bf16.msra.mxu1 %v352_v11 }
  0x19   :  { %335 = vmatprep.subr.bf16.mxu1 %v359_v0 }
  0x1c   :  { %336 = vmatpush3.bf16.msra.mxu1 %v353_v12 }
  0x1d   :  { %337 = vmatprep.subr.bf16.mxu1 %v359_v0 }
  0x20   :  { %338 = vmatpush3.bf16.msra.mxu1 %v354_v13 }
  0xdd   :  { %v98_v15 = vpop.f32.mrb[0].mxu0 }
  0xde   :  { %v99_v16 = vadd.f32 %v288_v14, %v98_v15  ;;  %v321_v17 = vpop.f32.mrb[1].mxu0 }
  0xdf   :  { %v101_v18 = vpop.f32.mrb[2].mxu0 }
  0xe0   :  { %v102_v19 = vadd.f32 %v288_v14, %v101_v18  ;;  %v322_v20 = vpop.f32.mrb[3].mxu0  ;;  %v105_v21 = vmax.f32 %v99_v16, 0.0 }
  0xe2   :  { %v106_v22 = vmax.f32 %v102_v19, 0.0 }
  0xe4   :  { %v109_v23 = vpack.c.bf16 %v106_v22, %v105_v21 }
  0xe6   :  { %340 = vmatmul.mubr.bf16.vlgmr.msra.gmra.mrb[0].mxu1 %v109_v23 }
 0x1b9   :  { %v208_v25 = vpop.f32.mrb[0].mxu1 }
 0x1ba   :  { %v215_v27 = vadd.f32 %v208_v25, %v107_v24  ;;  %v341_v28 = vpop.f32.mrb[1].mxu1 }
 0x1bb   :  { %v211_v29 = vpop.f32.mrb[2].mxu1 }
 0x1bc   :  { %217 = vst.msk [vmem:[#allocation2] sm:$0xff] %vm31_vm0, %v215_v27  ;;  %v216_v30 = vadd.f32 %v211_v29, %v108_v26  ;;  %v342_v31 = vpop.f32.mrb[3].mxu1 }
 0x1be   :  { %218 = vst.msk [vmem:[#allocation2 + $0x8] sm:$0xff] %vm31_vm0, %v216_v30 }
 0x1c3   :  { %v222_v33 = vld [vmem:[#allocation2] sm:$0xff] }
 0x1c4   :  { %v231_v34 = vadd.f32 %v300_v32, %v222_v33 }
 0x1c5   :  { %v223_v35 = vld [vmem:[#allocation2 + $0x8] sm:$0xff] }
 0x1c6   :  { %v237_v36 = vadd.f32 %v231_v34, %v34_v3  ;;  %v232_v37 = vadd.f32 %v300_v32, %v223_v35 }
 0x1c8   :  { %v239_v38 = vsel %vm31_vm0, %v237_v36, 0.0  ;;  %v238_v39 = vadd.f32 %v232_v37, %v35_v4 }
 0x1c9   :  { %240 = vadd.xlane.f32.xlu0 %v239_v38 }
 0x1ca   :  { %v242_v40 = vsel %vm31_vm0, %v238_v39, 0.0 }
 0x1cd   :  { %243 = vadd.xlane.f32.xlu0 %v242_v40 }
 0x256   :  { %v241_v41 = vpop.xlane.xlu0 %240 }
 0x257   :  { %v246_v42 = vmul.f32 0.03125, %v241_v41 }
 0x259   :  { %v248_v43 = vsub.f32 %v237_v36, %v246_v42 }
 0x25a   :  { %v244_v44 = vpop.xlane.xlu0 %243 }
 0x25b   :  { %v247_v45 = vmul.f32 0.03125, %v244_v44  ;;  %v250_v46 = vmul.f32 %v248_v43, %v248_v43 }
 0x25d   :  { %v249_v47 = vsub.f32 %v238_v39, %v247_v45  ;;  %v252_v48 = vsel %vm31_vm0, %v250_v46, 0.0 }
 0x25e   :  { %253 = vadd.xlane.f32.xlu1 %v252_v48 }
 0x25f   :  { %v251_v49 = vmul.f32 %v249_v47, %v249_v47 }
 0x261   :  { %v255_v50 = vsel %vm31_vm0, %v251_v49, 0.0 }
 0x262   :  { %256 = vadd.xlane.f32.xlu1 %v255_v50 }
 0x2eb   :  { %v254_v51 = vpop.xlane.xlu1 %253 }
 0x2ec   :  { %v258_v52 = vmul.f32 0.03125, %v254_v51 }
 0x2ee   :  { %v260_v53 = vadd.f32 1e-05, %v258_v52 }
 0x2ef   :  { %v257_v54 = vpop.xlane.xlu1 %256 }
 0x2f0   :  { %355 = vrsqrt.f32 %v260_v53  ;;  %v259_v55 = vmul.f32 0.03125, %v257_v54 }
 0x2f2   :  { %v261_v56 = vadd.f32 1e-05, %v259_v55 }
 0x2f4   :  { %357 = vrsqrt.f32 %v261_v56 }
 0x2fa   :  { %v356_v57 = vpop.eup %355 }
 0x2fb   :  { %v264_v59 = vmul.f32 %v356_v57, %v248_v43 }
 0x2fd   :  { %v272_v61 = vmul.f32 %v301_v58, %v264_v59 }
 0x2fe   :  { %v358_v62 = vpop.eup %357 }
 0x2ff   :  { %v280_v63 = vadd.f32 %v302_v60, %v272_v61  ;;  %v265_v0 = vmul.f32 %v358_v62, %v249_v47 }
 0x301   :  { %282 = vst.msk [vmem:[%s473_s7] sm:$0xff] %vm31_vm0, %v280_v63  ;;  %v273_v1 = vmul.f32 %v301_v58, %v265_v0 }
 0x303   :  { %v281_v2 = vadd.f32 %v302_v60, %v273_v1 }
 0x305   :  { %283 = vst.msk [vmem:[%s473_s7 + $0x8] sm:$0xff] %vm31_vm0, %v281_v2 }

// kernel: decoder_only_transformer.8
= control target key start
LH: loop header
LB: loop body
LE: loop exit
PB: predicated region body
PF: predicated region fallthrough
CT: control target
= control target key end

     0   :  { %s1518_s24 = smov 0   ;;  %s1520_s25 = smov 0   ;;  %s1729_s0 = inlined_call_operand.vmem [shape: f32[2,8,32], index: 0, kind: input, shape index: {}]   ;;  %s1730_s1 = inlined_call_operand.vmem [shape: bf16[2,4,8,16], index: 1, kind: input, shape index: {}]   ;;  %s1731_s2 = inlined_call_operand.vmem [shape: bf16[2,4,8,16], index: 2, kind: input, shape index: {}]   ;;  %s1732_s3 = inlined_call_operand.vmem [shape: bf16[2,4,8,16], index: 3, kind: input, shape index: {}]   ;;  %s1733_s4 = inlined_call_operand.vmem [shape: bf16[64,32], index: 4, kind: input, shape index: {}]   ;;  %s1734_s5 = inlined_call_operand.vmem [shape: f32[1,32], index: 5, kind: input, shape index: {}]   ;;  %s1735_s6 = inlined_call_operand.vmem [shape: f32[1,32], index: 6, kind: input, shape index: {}]   ;;  %s1736_s7 = inlined_call_operand.vmem [shape: f32[2,8,32], index: 7, kind: output, shape index: {}]  }
   0x1   :  { %s1522_s26 = smov 0  }
   0x2 LB: > { %s36_s27 = sadd.s32 1, %s1465_s25  ;;  %p1274_p0 = scmp.ge.s32.totalorder %s1469_s26, 1  ;;  %s1469_s26 = sphi %s1522_s26, %s17_s26   ;;  %s1465_s25 = sphi %s1520_s25, %s1738_s25   ;;  %s1461_s24 = sphi %s1518_s24, %s1737_s24  }
   0x3   : > { %p38_p1 = scmp.ge.s32.totalorder %s36_s27, 2  ;;  %p307_p2 = scmp.lt.s32.totalorder %s1469_s26, 3 }
   0x5   : > { %s1740_s27 = smov (%p38_p1, %s36_s27), 0  ;;  %p308_p3 = pnand %p1274_p0, %p307_p2 }
   0x6   : > { %p367_p4 = scmp.lt.s32.totalorder (!%p308_p3), %s1461_s24, 1  ;;  %vm421_vm0 = vcmask (!%p308_p3), 130048   ;;  %v1471_v0 = vmov (!%p308_p3), 0.0   ;;  %vm1472_vm1 = vmmov (!%p308_p3), 0   ;;  %vm412_vm2 = vcmask (!%p308_p3), 7168   ;;  %s1475_s23 = smov (!%p308_p3), 16  }
   0x7   : > { %311 = sbr.rel (%p308_p3) target bundleno = 1492 (0x5d4), region = 48  ;;  %1324 = vmatprep.subr.bf16.mxu1 (!%p308_p3), %v1471_v0  ;;  %422 = vst.msk [vmem:[#allocation4] sm:$0xff] (!%p308_p3), %vm421_vm0, %v1471_v0  ;;  %423 = vst.msk [vmem:[#allocation4 + $0x8] sm:$0xff] (!%p308_p3), %vm421_vm0, %v1471_v0  ;;  %1326 = vmatprep.mubr.msk.bf16.mxu1 (!%p308_p3), %vm1472_vm1, %v1471_v0  ;;  %v1473_v13 = vmov (!%p308_p3), -1e+30   ;;  %v632_v14 = vlaneseq (!%p308_p3)  ;;  %vm649_vm4 = vcmask (!%p308_p3), 64512  }
   0x8   : > { %424 = vst.msk [vmem:[#allocation4 + $0x10] sm:$0xff] (!%p308_p3), %vm421_vm0, %v1471_v0  ;;  %425 = vst.msk [vmem:[#allocation4 + $0x18] sm:$0xff] (!%p308_p3), %vm421_vm0, %v1471_v0  ;;  %1336 = vmatprep.subr.bf16.mxu0 (!%p308_p3), %v1471_v0  ;;  %1338 = vmatprep.mubr.msk.bf16.mxu0 (!%p308_p3), %vm1472_vm1, %v1471_v0  ;;  %v1474_v45 = vmov (!%p308_p3), 0   ;;  %vm746_vm5 = vcmask (!%p308_p3), 1043456   ;;  %s1477_s29 = smov (!%p308_p3), 48   ;;  %vm1013_vm6 = vcmask (!%p308_p3), 261248  }
   0x9   : > { %413 = vst.msk [vmem:[#allocation2] sm:$0xff] (!%p308_p3), %vm412_vm2, %v1473_v13  ;;  %414 = vst.msk [vmem:[#allocation2 + $0x8] sm:$0xff] (!%p308_p3), %vm412_vm2, %v1473_v13  ;;  %v633_v15 = vshrl.u32 (!%p308_p3), %v632_v14, 7  ;;  %v637_v16 = vand.u32 (!%p308_p3), 127, %v632_v14  ;;  %1415 = vset.pattern.permute.xlu0 (!%p308_p3), %v1474_v45  ;;  %1416 = vset.pattern.permute.xlu1 (!%p308_p3), %v1474_v45  ;;  %vm1019_vm7 = vcmask (!%p308_p3), 392448   ;;  %vm1025_vm8 = vcmask (!%p308_p3), 523648  }
   0xa   : > { %415 = vst.msk [vmem:[#allocation2 + $0x10] sm:$0xff] (!%p308_p3), %vm412_vm2, %v1473_v13  ;;  %416 = vst.msk [vmem:[#allocation2 + $0x18] sm:$0xff] (!%p308_p3), %vm412_vm2, %v1473_v13  ;;  %vm1061_vm9 = vcmask (!%p308_p3), 523264   ;;  %vm1109_vm10 = vcmask (!%p308_p3), 261120  }
   0xb   : > { %417 = vst.msk [vmem:[#allocation3] sm:$0xff] (!%p308_p3), %vm412_vm2, %v1471_v0  ;;  %418 = vst.msk [vmem:[#allocation3 + $0x8] sm:$0xff] (!%p308_p3), %vm412_vm2, %v1471_v0  ;;  %vm640_vm3 = vcmp.gt.s32.totalorder (!%p308_p3), %v637_v16, %v633_v15 }
   0xc   : > { %419 = vst.msk [vmem:[#allocation3 + $0x10] sm:$0xff] (!%p308_p3), %vm412_vm2, %v1471_v0  ;;  %420 = vst.msk [vmem:[#allocation3 + $0x18] sm:$0xff] (!%p308_p3), %vm412_vm2, %v1471_v0 }
   0xe   : > { %s1742_s24 = smov (!%p367_p4, %s1461_s24), 1 }
   0xf   : > { %s1553_s28 = sshll.u32 %s1742_s24, 4  ;;  %s1275_s30 = sshll.u32 %s1742_s24, 3 }
  0x10   : > { %s389_s8 = scalar_lea.vmem %s1731_s2, %s1553_s28  ;;  %s381_s11 = scalar_lea.vmem %s1730_s1, %s1553_s28  ;;  %v1609_v46 = vld [vmem:[#allocation2] sm:$0xff]  ;;  %v1628_v54 = vld [vmem:[#allocation2 + $0x8] sm:$0xff] }
  0x11   : > { %v435_v1 = vld [vmem:[%s389_s8] sm:$0xf]  ;;  %v437_v3 = vld [vmem:[%s389_s8 + $0x8] sm:$0xf]  ;;  %v436_v5 = vld [vmem:[%s389_s8 + $0x4] sm:$0xf]  ;;  %s397_s14 = scalar_lea.vmem %s1732_s3, %s1553_s28  ;;  %s373_s10 = scalar_lea.vmem %s1729_s0, %s1275_s30 }
  0x12   : > { %v448_v2 = vsel %vm421_vm0, %v435_v1, 0  ;;  %v540_v4 = vsel %vm421_vm0, %v437_v3, 0  ;;  %v431_v6 = vld [vmem:[%s381_s11] sm:$0xf]  ;;  %v494_v7 = vsel %vm421_vm0, %v436_v5, 0  ;;  %v1611_v48 = vld [vmem:[#allocation2 + $0x10] sm:$0xff]  ;;  %s404_s16 = scalar_lea.vmem %s1736_s7, %s1275_s30 }
  0x13   : > { %1325 = vmatpush3.bf16.xpose.msra.mxu1 %v448_v2  ;;  %1337 = vmatpush3.bf16.xpose.msra.mxu0 %v540_v4  ;;  %v433_v8 = vld [vmem:[%s381_s11 + $0x8] sm:$0xf]  ;;  %v438_v9 = vld [vmem:[%s389_s8 + $0xc] sm:$0xf]  ;;  %v432_v10 = vld [vmem:[%s381_s11 + $0x4] sm:$0xf] }
  0x14   : > { %1330 = vmatprep.subr.bf16.mxu1 %v1471_v0  ;;  %1348 = vmatprep.subr.bf16.mxu0 %v1471_v0  ;;  %v586_v11 = vsel %vm421_vm0, %v438_v9, 0  ;;  %v434_v12 = vld [vmem:[%s381_s11 + $0xc] sm:$0xf]  ;;  %v1638_v58 = vld [vmem:[#allocation2 + $0x18] sm:$0xff]  ;;  %v439_v59 = vld [vmem:[%s397_s14] sm:$0xf] }
  0x15   : > { %v748_v61 = vsel %vm746_vm5, %v439_v59, 0  ;;  %v440_v1 = vld [vmem:[%s397_s14 + $0x4] sm:$0xf]  ;;  %v441_v3 = vld [vmem:[%s397_s14 + $0x8] sm:$0xf]  ;;  %v713_v45 = vld [vmem:[#allocation3 + $0x18] sm:$0xff] }
  0x16   : > { %v794_v2 = vsel %vm746_vm5, %v440_v1, 0  ;;  %v840_v4 = vsel %vm746_vm5, %v441_v3, 0  ;;  %v442_v5 = vld [vmem:[%s397_s14 + $0xc] sm:$0xf]  ;;  %s1476_s28 = smov 32  }
  0x1a   : > { %1327 = vmatmul.mubr.msk.bf16.vlgmr.msra.gmra.mrb[0].mxu1 %vm421_vm0, %v431_v6  ;;  %1339 = vmatmul.mubr.msk.bf16.vlgmr.msra.gmra.mrb[0].mxu0 %vm421_vm0, %v433_v8  ;;  %v886_v6 = vsel %vm746_vm5, %v442_v5, 0 }
  0x1b   : > { %1331 = vmatpush3.bf16.xpose.msra.mxu1 %v494_v7  ;;  %1332 = vmatprep.mubr.msk.bf16.mxu1 %vm1472_vm1, %v1471_v0 }
  0x1c   : > { %1342 = vmatprep.subr.bf16.mxu1 %v1471_v0  ;;  %1350 = vmatprep.mubr.msk.bf16.mxu0 %vm1472_vm1, %v1471_v0 }
  0x1d   : > { %1349 = vmatpush3.bf16.msra.mxu0 %v748_v61 }
  0x1e   : > { %1360 = vmatprep.subr.bf16.mxu0 %v1471_v0 }
  0x22   : > { %1333 = vmatmul.mubr.msk.bf16.vlgmr.msra.gmra.mrb[4].mxu1 %vm421_vm0, %v432_v10 }
  0x23   : > { %1343 = vmatpush3.bf16.xpose.msra.mxu1 %v586_v11  ;;  %1344 = vmatprep.mubr.msk.bf16.mxu1 %vm1472_vm1, %v1471_v0 }
  0x24   : > { %1354 = vmatprep.subr.bf16.mxu1 %v1471_v0 }
  0x2a   : > { %1345 = vmatmul.mubr.msk.bf16.vlgmr.msra.gmra.mrb[8].mxu1 %vm421_vm0, %v434_v12 }
  0x2b   : > { %1356 = vmatprep.mubr.msk.bf16.mxu1 %vm1472_vm1, %v1471_v0  ;;  %1355 = vmatpush3.bf16.msra.mxu1 %v794_v2 }
  0x2c   : > { %1366 = vmatprep.subr.bf16.mxu1 %v1471_v0 }
  0xed   : > { %v484_v17 = vpop.f32.mrb[0].mxu1  ;;  %v576_v21 = vpop.f32.mrb[0].mxu0 }
  0xee   : > { %v628_v18 = vmul.f32 0.17677669, %v484_v17  ;;  %v1328_v19 = vpop.f32.mrb[1].mxu1  ;;  %v630_v24 = vmul.f32 0.17677669, %v576_v21  ;;  %v1340_v25 = vpop.f32.mrb[1].mxu0 }
  0xef   : > { %v487_v20 = vpop.f32.mrb[2].mxu1  ;;  %v579_v27 = vpop.f32.mrb[2].mxu0 }
  0xf0   : > { %v1329_v22 = vpop.f32.mrb[3].mxu1  ;;  %v1596_v23 = vsel %vm640_vm3, -1e+30, %v628_v18  ;;  %v1341_v28 = vpop.f32.mrb[3].mxu0  ;;  %v1601_v29 = vsel %vm640_vm3, -1e+30, %v630_v24 }
  0xf1   : > { %v650_v26 = vsel %vm649_vm4, %v1596_v23, -inf  ;;  %v656_v30 = vsel %vm649_vm4, %v1601_v29, -inf }
  0xf2   : > { %651 = vmax.xlane.f32.xlu0 %v650_v26  ;;  %657 = vmax.xlane.f32.xlu1 %v656_v30 }
  0xf5   : > { %v530_v31 = vpop.f32.mrb[4].mxu1 }
  0xf6   : > { %v629_v32 = vmul.f32 0.17677669, %v530_v31  ;;  %v1334_v33 = vpop.f32.mrb[5].mxu1 }
  0xf7   : > { %v533_v34 = vpop.f32.mrb[6].mxu1 }
  0xf8   : > { %v1335_v35 = vpop.f32.mrb[7].mxu1  ;;  %v642_v36 = vsel %vm640_vm3, -1e+30, %v629_v32 }
  0xf9   : > { %v653_v37 = vsel %vm649_vm4, %v642_v36, -inf }
  0xfa   : > { %654 = vmax.xlane.f32.xlu0 %v653_v37 }
  0xfd   : > { %v622_v38 = vpop.f32.mrb[8].mxu1 }
  0xfe   : > { %v631_v39 = vmul.f32 0.17677669, %v622_v38  ;;  %v1346_v40 = vpop.f32.mrb[9].mxu1  ;;  %v711_v38 = vld [vmem:[#allocation3 + $0x8] sm:$0xff] }
  0xff   : > { %v625_v41 = vpop.f32.mrb[10].mxu1 }
 0x100   : > { %v1347_v42 = vpop.f32.mrb[11].mxu1  ;;  %v644_v43 = vsel %vm640_vm3, -1e+30, %v631_v39  ;;  %v712_v41 = vld [vmem:[#allocation3 + $0x10] sm:$0xff] }
 0x101   : > { %v659_v44 = vsel %vm649_vm4, %v644_v43, -inf }
 0x102   : > { %660 = vmax.xlane.f32.xlu1 %v659_v44 }
 0x17f   : > { %v652_v47 = vpop.xlane.xlu0 %651  ;;  %v658_v50 = vpop.xlane.xlu1 %657 }
 0x180   : > { %v1614_v49 = vmax.f32 %v1609_v46, %v652_v47  ;;  %v1622_v52 = vmax.f32 %v1611_v48, %v658_v50 }
 0x182   : > { %v666_v51 = vsub.f32 %v1609_v46, %v1614_v49  ;;  %964 = vst.msk [vmem:[#allocation2] sm:$0xff] %vm412_vm2, %v1614_v49  ;;  %680 = vperm.xlu0 %1415, %v1614_v49   ;;  %v668_v53 = vsub.f32 %v1611_v48, %v1622_v52  ;;  %966 = vst.msk [vmem:[#allocation2 + $0x10] sm:$0xff] %vm412_vm2, %v1622_v52 }
 0x184   : > { %v674_v30 = vmul.f32 1.442695, %v668_v53  ;;  %v670_v37 = vmul.f32 1.442695, %v666_v51  ;;  %v710_v53 = vld [vmem:[#allocation3] sm:$0xff] }
 0x187   : > { %v655_v55 = vpop.xlane.xlu0 %654 }
 0x188   : > { %v1631_v56 = vmax.f32 %v1628_v54, %v655_v55 }
 0x18a   : > { %v667_v57 = vsub.f32 %v1628_v54, %v1631_v56  ;;  %965 = vst.msk [vmem:[#allocation2 + $0x8] sm:$0xff] %vm412_vm2, %v1631_v56  ;;  %685 = vperm.xlu1 %1416, %v1631_v56  }
 0x18c   : > { %v672_v32 = vmul.f32 1.442695, %v667_v57 }
 0x18e   : > { %690 = vperm.xlu1 %1416, %v1622_v52  }
 0x18f   : > { %v661_v60 = vpop.xlane.xlu1 %660 }
 0x190   : > { %v665_v62 = vmax.f32 %v1638_v58, %v661_v60 }
 0x192   : > { %v669_v63 = vsub.f32 %v1638_v58, %v665_v62  ;;  %967 = vst.msk [vmem:[#allocation2 + $0x18] sm:$0xff] %vm412_vm2, %v665_v62  ;;  %695 = vperm.xlu1 %1416, %v665_v62  }
 0x194   : > { %v676_v33 = vmul.f32 1.442695, %v669_v63 }
 0x201   : > { %v681_v7 = vpop.permute.xlu0 %680 }
 0x202   : > { %v698_v8 = vsub.f32 %v1596_v23, %v681_v7  ;;  %v930_v7 = vld [vmem:[#allocation4 + $0x10] sm:$0xff] }
 0x204   : > { %v702_v9 = vmul.f32 1.442695, %v698_v8 }
 0x206   : > { %1421 = vpow2.f32 %v702_v9 }
 0x209   : > { %v686_v10 = vpop.permute.xlu1 %685 }
 0x20a   : > { %v699_v11 = vsub.f32 %v642_v36, %v686_v10 }
 0x20c   : > { %v704_v12 = vmul.f32 1.442695, %v699_v11 }
 0x20d   : > { %v691_v13 = vpop.permute.xlu1 %690 }
 0x20e   : > { %1423 = vpow2.f32 %v704_v12  ;;  %v700_v14 = vsub.f32 %v1601_v29, %v691_v13 }
 0x210   : > { %v1422_v15 = vpop.eup %1421  ;;  %v706_v16 = vmul.f32 1.442695, %v700_v14 }
 0x211   : > { %v696_v17 = vpop.permute.xlu1 %695  ;;  %v739_v18 = vpack.c.bf16 %v1422_v15, %v1422_v15  ;;  %v718_v31 = vsel %vm649_vm4, %v1422_v15, 0.0  ;;  %v931_v15 = vld [vmem:[#allocation4 + $0x18] sm:$0xff] }
 0x212   : > { %1425 = vpow2.f32 %v706_v16  ;;  %v701_v19 = vsub.f32 %v644_v43, %v696_v17 }
 0x213   : > { %1351 = vmatmul.mubr.msk.bf16.vlgmr.msra.gmra.mrb[4].mxu0 %vm649_vm4, %v739_v18 }
 0x214   : > { %v708_v20 = vmul.f32 1.442695, %v701_v19  ;;  %1361 = vmatpush3.bf16.msra.mxu0 %v840_v4  ;;  %1362 = vmatprep.mubr.msk.bf16.mxu0 %vm1472_vm1, %v1471_v0  ;;  %v929_v4 = vld [vmem:[#allocation4 + $0x8] sm:$0xff] }
 0x215   : > { %1372 = vmatprep.subr.bf16.mxu0 %v1471_v0 }
 0x216   : > { %1427 = vpow2.f32 %v708_v20 }
 0x217   : > { %1429 = vpow2.f32 %v674_v30  ;;  %v1419_v30 = vld [vmem:[%s1733_s4 + $0x10] sm:$0xff]  }
 0x218   : > { %v1424_v21 = vpop.eup %1423  ;;  %1431 = vpow2.f32 %v672_v32 }
 0x219   : > { %v721_v22 = vsel %vm649_vm4, %v1424_v21, 0.0  ;;  %v740_v23 = vpack.c.bf16 %v1424_v21, %v1424_v21  ;;  %1433 = vpow2.f32 %v676_v33  ;;  %v1420_v33 = vld [vmem:[%s1733_s4 + $0x18] sm:$0xff]  }
 0x21a   : > { %722 = vadd.xlane.f32.xlu1 %v721_v22  ;;  %1435 = vpow2.f32 %v670_v37 }
 0x21b   : > { %1357 = vmatmul.mubr.msk.bf16.vlgmr.msra.gmra.mrb[12].mxu1 %vm649_vm4, %v740_v23 }
 0x21c   : > { %v1426_v24 = vpop.eup %1425  ;;  %1367 = vmatpush3.bf16.msra.mxu1 %v886_v6  ;;  %1368 = vmatprep.mubr.msk.bf16.mxu1 %vm1472_vm1, %v1471_v0 }
 0x21d   : > { %v724_v25 = vsel %vm649_vm4, %v1426_v24, 0.0  ;;  %v741_v26 = vpack.c.bf16 %v1426_v24, %v1426_v24 }
 0x21e   : > { %725 = vadd.xlane.f32.xlu0 %v724_v25 }
 0x21f   : > { %1363 = vmatmul.mubr.msk.bf16.vlgmr.msra.gmra.mrb[8].mxu0 %vm649_vm4, %v741_v26 }
 0x220   : > { %v1428_v27 = vpop.eup %1427  ;;  %1380 = vmatprep.mubr.msk.bf16.mxu0 %vm1472_vm1, %v1471_v0 }
 0x221   : > { %v727_v28 = vsel %vm649_vm4, %v1428_v27, 0.0  ;;  %v742_v29 = vpack.c.bf16 %v1428_v27, %v1428_v27  ;;  %v1430_v34 = vpop.eup %1429 }
 0x222   : > { %728 = vadd.xlane.f32.xlu1 %v727_v28  ;;  %v1432_v35 = vpop.eup %1431  ;;  %v716_v43 = vmul.f32 %v1430_v34, %v712_v41  ;;  %v1417_v28 = vld [vmem:[%s1733_s4] sm:$0xff]  }
 0x223   : > { %1369 = vmatmul.mubr.msk.bf16.vlgmr.msra.gmra.mrb[16].mxu1 %vm649_vm4, %v742_v29  ;;  %v1434_v36 = vpop.eup %1433  ;;  %v715_v39 = vmul.f32 %v1432_v35, %v711_v38  ;;  %1373 = vmatpush3.bf16.msra.mxu0 %v1417_v28  ;;  %v1418_v29 = vld [vmem:[%s1733_s4 + $0x8] sm:$0xff]   ;;  %v928_v38 = vld [vmem:[#allocation4] sm:$0xff] }
 0x224   : > { %v717_v48 = vmul.f32 %v1434_v36, %v713_v45  ;;  %v1436_v50 = vpop.eup %1435  ;;  %1374 = vmatprep.subr.bf16.mxu0 %v1471_v0 }
 0x225   : > { %v714_v51 = vmul.f32 %v1436_v50, %v710_v53 }
 0x226   : > { %719 = vadd.xlane.f32.xlu1 %v718_v31 }
 0x227   : > { %1375 = vmatpush3.bf16.msra.mxu0 %v1418_v29 }
 0x228   : > { %1376 = vmatprep.subr.bf16.mxu0 %v1471_v0 }
 0x22b   : > { %1377 = vmatpush3.bf16.msra.mxu0 %v1419_v30 }
 0x22c   : > { %1378 = vmatprep.subr.bf16.mxu0 %v1471_v0 }
 0x22f   : > { %1379 = vmatpush3.bf16.msra.mxu0 %v1420_v33 }
 0x234   : > { %944 = vperm.xlu0 %1415, %v1430_v34  }
 0x237   : > { %939 = vperm.xlu1 %1416, %v1432_v35  }
 0x23b   : > { %949 = vperm.xlu1 %1416, %v1434_v36  }
 0x2a7   : > { %v723_v40 = vpop.xlane.xlu1 %722 }
 0x2a8   : > { %v731_v42 = vadd.f32 %v723_v40, %v715_v39 }
 0x2aa   : > { %736 = vst.msk [vmem:[#allocation3 + $0x8] sm:$0xff] %vm412_vm2, %v731_v42 }
 0x2ab   : > { %v726_v44 = vpop.xlane.xlu0 %725 }
 0x2ac   : > { %v732_v47 = vadd.f32 %v726_v44, %v716_v43 }
 0x2ae   : > { %737 = vst.msk [vmem:[#allocation3 + $0x10] sm:$0xff] %vm412_vm2, %v732_v47 }
 0x2af   : > { %v729_v52 = vpop.xlane.xlu1 %728 }
 0x2b0   : > { %v733_v46 = vadd.f32 %v729_v52, %v717_v48 }
 0x2b1   : > { %v976_v49 = vld [vmem:[#allocation3 + $0x8] sm:$0xff] }
 0x2b2   : > { %738 = vst.msk [vmem:[#allocation3 + $0x18] sm:$0xff] %vm412_vm2, %v733_v46  ;;  %1437 = vrcp.f32 %v976_v49  ;;  %v1105_v49 = vld [vmem:[%s373_s10] sm:$0xff] }
 0x2b3   : > { %v720_v54 = vpop.xlane.xlu1 %719  ;;  %v945_v8 = vpop.permute.xlu0 %944 }
 0x2b4   : > { %v730_v55 = vadd.f32 %v720_v54, %v714_v51  ;;  %v954_v13 = vmul.f32 %v945_v8, %v930_v7  ;;  %v1297_v7 = vld [vmem:[%s1735_s6] ss:$0 sm:$0xff] }
 0x2b5   : > { %v977_v56 = vld [vmem:[#allocation3 + $0x10] sm:$0xff] }
 0x2b6   : > { %735 = vst.msk [vmem:[#allocation3] sm:$0xff] %vm412_vm2, %v730_v55  ;;  %1439 = vrcp.f32 %v977_v56 }
 0x2b7   : > { %v940_v5 = vpop.permute.xlu1 %939 }
 0x2b8   : > { %v953_v6 = vmul.f32 %v940_v5, %v929_v4  ;;  %v1296_v5 = vld [vmem:[%s1734_s5] ss:$0 sm:$0xff] }
 0x2b9   : > { %v978_v57 = vld [vmem:[#allocation3 + $0x18] sm:$0xff] }
 0x2ba   : > { %1441 = vrcp.f32 %v978_v57 }
 0x2bb   : > { %v950_v16 = vpop.permute.xlu1 %949 }
 0x2bc   : > { %v1438_v58 = vpop.eup %1437  ;;  %v955_v21 = vmul.f32 %v950_v16, %v931_v15 }
 0x2bd   : > { %990 = vperm.xlu1 %1416, %v1438_v58   ;;  %v975_v59 = vld [vmem:[#allocation3] sm:$0xff] }
 0x2be   : > { %1443 = vrcp.f32 %v975_v59 }
 0x2c0   : > { %v1440_v60 = vpop.eup %1439 }
 0x2c1   : > { %995 = vperm.xlu1 %1416, %v1440_v60  }
 0x2c4   : > { %v1442_v61 = vpop.eup %1441 }
 0x2c5   : > { %934 = vperm.xlu1 %1416, %v1436_v50   ;;  %1000 = vperm.xlu0 %1415, %v1442_v61  }
 0x2c8   : > { %v1444_v62 = vpop.eup %1443 }
 0x2c9   : > { %985 = vperm.xlu0 %1415, %v1444_v62  }
 0x2e6   : > { %v784_v63 = vpop.f32.mrb[4].mxu0 }
 0x2e7   : > { %v1352_v1 = vpop.f32.mrb[5].mxu0 }
 0x2e8   : > { %v787_v2 = vpop.f32.mrb[6].mxu0 }
 0x2e9   : > { %v1353_v3 = vpop.f32.mrb[7].mxu0 }
 0x2ee   : > { %v830_v9 = vpop.f32.mrb[12].mxu1 }
 0x2ef   : > { %v957_v10 = vadd.f32 %v953_v6, %v830_v9  ;;  %v1358_v11 = vpop.f32.mrb[13].mxu1 }
 0x2f0   : > { %v833_v12 = vpop.f32.mrb[14].mxu1 }
 0x2f1   : > { %961 = vst.msk [vmem:[#allocation4 + $0x8] sm:$0xff] %vm421_vm0, %v957_v10  ;;  %v1359_v14 = vpop.f32.mrb[15].mxu1 }
 0x2f2   : > { %v876_v17 = vpop.f32.mrb[8].mxu0 }
 0x2f3   : > { %v958_v18 = vadd.f32 %v954_v13, %v876_v17  ;;  %v1364_v19 = vpop.f32.mrb[9].mxu0 }
 0x2f4   : > { %v879_v20 = vpop.f32.mrb[10].mxu0 }
 0x2f5   : > { %962 = vst.msk [vmem:[#allocation4 + $0x10] sm:$0xff] %vm421_vm0, %v958_v18  ;;  %v1365_v22 = vpop.f32.mrb[11].mxu0 }
 0x2f6   : > { %v922_v23 = vpop.f32.mrb[16].mxu1 }
 0x2f7   : > { %v959_v24 = vadd.f32 %v955_v21, %v922_v23  ;;  %v1370_v25 = vpop.f32.mrb[17].mxu1 }
 0x2f8   : > { %v925_v26 = vpop.f32.mrb[18].mxu1  ;;  %v972_v32 = vld [vmem:[#allocation4 + $0x8] sm:$0xff] }
 0x2f9   : > { %963 = vst.msk [vmem:[#allocation4 + $0x18] sm:$0xff] %vm421_vm0, %v959_v24  ;;  %v1371_v27 = vpop.f32.mrb[19].mxu1 }
 0x2fc   : > { %v973_v35 = vld [vmem:[#allocation4 + $0x10] sm:$0xff] }
 0x300   : > { %v974_v40 = vld [vmem:[#allocation4 + $0x18] sm:$0xff] }
 0x33c   : > { %v991_v31 = vpop.permute.xlu1 %990 }
 0x33d   : > { %v1004_v34 = vmul.f32 %v991_v31, %v972_v32 }
 0x33f   : > { %1010 = vrot.lane.b32.xlu1 %v1004_v34, %s1475_s23 }
 0x340   : > { %v996_v36 = vpop.permute.xlu1 %995 }
 0x341   : > { %v1005_v37 = vmul.f32 %v996_v36, %v973_v35 }
 0x343   : > { %1016 = vrot.lane.b32.xlu0 %v1005_v37, %s1476_s28 }
 0x344   : > { %v1001_v39 = vpop.permute.xlu0 %1000  ;;  %v935_v41 = vpop.permute.xlu1 %934 }
 0x345   : > { %v1006_v42 = vmul.f32 %v1001_v39, %v974_v40  ;;  %v952_v43 = vmul.f32 %v935_v41, %v928_v38 }
 0x347   : > { %v956_v44 = vadd.f32 %v952_v43, %v784_v63  ;;  %1022 = vrot.lane.b32.xlu1 %v1006_v42, %s1477_s29 }
 0x348   : > { %v986_v0 = vpop.permute.xlu0 %985 }
 0x349   : > { %960 = vst.msk [vmem:[#allocation4] sm:$0xff] %vm421_vm0, %v956_v44 }
 0x350   : > { %v971_v45 = vld [vmem:[#allocation4] sm:$0xff] }
 0x351   : > { %v1003_v47 = vmul.f32 %v986_v0, %v971_v45 }
 0x353   : > { %1008 = vst.msk [vmem:[#allocation5] sm:$0xff] %vm421_vm0, %v1003_v47 }
 0x3b1   : > { %v1011_v48 = vpop.permute.xlu1 %1010 }
 0x3b2   : > { %1014 = vst.msk [vmem:[#allocation5] sm:$0xff] %vm1013_vm6, %v1011_v48 }
 0x3b5   : > { %v1017_v50 = vpop.permute.xlu0 %1016 }
 0x3b6   : > { %1020 = vst.msk [vmem:[#allocation5] sm:$0xff] %vm1019_vm7, %v1017_v50 }
 0x3b9   : > { %v1023_v52 = vpop.permute.xlu1 %1022 }
 0x3ba   : > { %1026 = vst.msk [vmem:[#allocation5] sm:$0xff] %vm1025_vm8, %v1023_v52 }
 0x3c1   : > { %v1027_v53 = vld [vmem:[#allocation5] sm:$0xff] }
 0x3c2   : > { %v1028_v46 = vpack.c.bf16 %v1027_v53, %v1027_v53 }
 0x3c4   : > { %1381 = vmatmul.mubr.msk.bf16.vlgmr.msra.gmra.mrb[12].mxu0 %vm1061_vm9, %v1028_v46 }
 0x497   : > { %v1099_v51 = vpop.f32.mrb[12].mxu0 }
 0x498   : > { %v1108_v54 = vadd.f32 %v1105_v49, %v1099_v51  ;;  %v1382_v55 = vpop.f32.mrb[13].mxu0 }
 0x499   : > { %v1102_v56 = vpop.f32.mrb[14].mxu0 }
 0x49a   : > { %v1383_v57 = vpop.f32.mrb[15].mxu0  ;;  %v1110_v58 = vsel %vm1109_vm10, %v1108_v54, 0.0 }
 0x49b   : > { %1111 = vadd.xlane.f32.xlu0 %v1110_v58 }
 0x528   : > { %v1112_v59 = vpop.xlane.xlu0 %1111 }
 0x529   : > { %v1114_v60 = vmul.f32 0.03125, %v1112_v59 }
 0x52b   : > { %v1115_v61 = vsub.f32 %v1108_v54, %v1114_v60 }
 0x52d   : > { %v1116_v62 = vmul.f32 %v1115_v61, %v1115_v61 }
 0x52f   : > { %v1117_v63 = vsel %vm1109_vm10, %v1116_v62, 0.0 }
 0x530   : > { %1118 = vadd.xlane.f32.xlu1 %v1117_v63 }
 0x5bd   : > { %v1119_v1 = vpop.xlane.xlu1 %1118 }
 0x5be   : > { %v1120_v2 = vmul.f32 0.03125, %v1119_v1 }
 0x5c0   : > { %v1121_v3 = vadd.f32 1e-05, %v1120_v2 }
 0x5c2   : > { %1445 = vrsqrt.f32 %v1121_v3 }
 0x5cc   : > { %v1446_v4 = vpop.eup %1445 }
 0x5cd   : > { %v1123_v6 = vmul.f32 %v1446_v4, %v1115_v61 }
 0x5cf   : > { %v1130_v8 = vmul.f32 %v1296_v5, %v1123_v6 }
 0x5d1   : > { %v1137_v9 = vadd.f32 %v1297_v7, %v1130_v8 }
 0x5d3   : > { %1138 = vst.msk [vmem:[%s404_s16] sm:$0xff] %vm1109_vm10, %v1137_v9 }
 0x5d4 PF: > { %s17_s26 = sadd.s32 1, %s1469_s26   ;;  %s1737_s24 = smov %s1465_s25 }
 0x5d5   : > { %p14_p5 = scmp.ge.s32.totalorder %s17_s26, 4   ;;  %s1738_s25 = smov %s1740_s27 }
 0x5d7   :  { %16 = sbr.rel (!%p14_p5) target bundleno = 2 (0x2), region = 99 }

</bundles_post_ra>
